<compile_context>
chip_gen: v7x
topology: tpu7x:2x2x1
jax: 0.10.0
libtpu: 0.0.40
codegen_flags: <defaults>
</compile_context>

<pallas_src>
import functools
import math

import jax
import jax.numpy as jnp
from jax import lax
from jax.experimental import pallas as pl
from jax.experimental.pallas import tpu as pltpu

# ----------------------------- config (small) -------------------------------
VOCAB = 50
MAX_POS = 16
TYPE_VOCAB = 2
HIDDEN = 32          # stand-in for 768 (cls_hid_dim)
N_HEADS = 4
HEAD_DIM = HIDDEN // N_HEADS
N_LAYERS = 2
INTERMEDIATE = 64
MLP_HID = 16         # args.hidden_dim in BERT_Classifier
LN_EPS = 1e-12
BN_EPS = 1e-5


# ----------------------------- in-kernel helpers ----------------------------
def _layernorm(x, g, b, eps):
    mu = jnp.mean(x, axis=-1, keepdims=True)
    var = jnp.mean((x - mu) ** 2, axis=-1, keepdims=True)
    return (x - mu) * lax.rsqrt(var + eps) * g + b


def _gelu(x):
    # TODO(synk): tanh-approx GELU (HF BERT default is exact erf GELU).
    c = math.sqrt(2.0 / math.pi)
    return 0.5 * x * (1.0 + jnp.tanh(c * (x + 0.044715 * x * x * x)))


# ----------------------------- fused forward kernel -------------------------
def _bert_forward_kernel(ids_ref, tt_ref, mask_ref,
                         wemb_ref, pemb_ref, temb_ref,
                         embg_ref, embb_ref,
                         wqkv_ref, bqkv_ref, wo_ref, bo_ref,
                         ln1g_ref, ln1b_ref,
                         wi_ref, bi_ref, wf_ref, bf_ref,
                         ln2g_ref, ln2b_ref,
                         w1_ref, b1_ref, w2_ref, b2_ref,
                         out_ref, *, scale, eps):
    """Whole BERT_GenderClassifier forward for one batch element.

    Embedding lookup (one-hot matmul), embedding LayerNorm, both encoder
    layers (fused QKV, per-head attention, output proj, LN1, FFN/GELU, LN2)
    and the BN-folded classifier MLP all stay in VMEM/vregs; only the (1,2)
    logit row is written back.
    """
    S = pemb_ref.shape[0]

    # ---- embeddings via one-hot matmuls (MXU), no HBM gather -----------
    ids = ids_ref[0]                                             # (S, 1) int32
    tts = tt_ref[0]                                              # (S, 1) int32
    word_oh = (ids == lax.broadcasted_iota(jnp.int32, (S, VOCAB), 1)
               ).astype(jnp.float32)                             # (S, VOCAB)
    type_oh = (tts == lax.broadcasted_iota(jnp.int32, (S, TYPE_VOCAB), 1)
               ).astype(jnp.float32)                             # (S, 2)
    x = (jnp.dot(word_oh, wemb_ref[...], preferred_element_type=jnp.float32)
         + jnp.dot(type_oh, temb_ref[...], preferred_element_type=jnp.float32)
         + pemb_ref[...])                                        # (S, H)
    x = _layernorm(x, embg_ref[...], embb_ref[...], eps)

    # ---- HF-style additive attention-mask bias --------------------------
    bias = (1.0 - mask_ref[0].astype(jnp.float32)) * -10000.0    # (1, S)

    # ---- encoder layers (statically unrolled, weights indexed by layer) --
    for l in range(N_LAYERS):
        wqkv = wqkv_ref[l]                                       # (H, 3H)
        wo = wo_ref[l]                                           # (H, H)

        qkv = (jnp.dot(x, wqkv, preferred_element_type=jnp.float32)
               + bqkv_ref[l])                                    # (S, 3H)

        attn = jnp.zeros_like(x)                                 # (S, H)
        for h in range(N_HEADS):
            lo = h * HEAD_DIM
            hi = lo + HEAD_DIM
            qh = qkv[:, lo:hi]                                   # (S, Dh)
            kh = qkv[:, HIDDEN + lo:HIDDEN + hi]                 # (S, Dh)
            vh = qkv[:, 2 * HIDDEN + lo:2 * HIDDEN + hi]         # (S, Dh)
            s = lax.dot_general(qh, kh, (((1,), (1,)), ((), ())),
                                preferred_element_type=jnp.float32)  # (S, S)
            s = s * scale + bias
            s = s - jnp.max(s, axis=-1, keepdims=True)
            p = jnp.exp(s)
            p = p * pl.reciprocal(jnp.sum(p, axis=-1, keepdims=True),
                                  approx=True)
            ctx_h = jnp.dot(p, vh, preferred_element_type=jnp.float32)
            # output projection folded per head: ctx @ Wo == sum_h ctx_h@Wo[h]
            attn = attn + jnp.dot(ctx_h, wo[lo:hi, :],
                                  preferred_element_type=jnp.float32)
        attn = attn + bo_ref[l]

        # residual + LayerNorm 1
        x = _layernorm(attn + x, ln1g_ref[l], ln1b_ref[l], eps)

        # FFN (GELU)
        inter = (jnp.dot(x, wi_ref[l], preferred_element_type=jnp.float32)
                 + bi_ref[l])
        inter = _gelu(inter)
        ffn = (jnp.dot(inter, wf_ref[l], preferred_element_type=jnp.float32)
               + bf_ref[l])

        # residual + LayerNorm 2
        x = _layernorm(ffn + x, ln2g_ref[l], ln2b_ref[l], eps)

    # ---- CLS token -> BN-folded classifier MLP ---------------------------
    cls = x[0:1, :]                                              # (1, H)
    h1 = (jnp.dot(cls, w1_ref[...], preferred_element_type=jnp.float32)
          + b1_ref[...])
    h1 = jnp.where(h1 >= 0, h1, 0.01 * h1)                       # LeakyReLU
    logits = (jnp.dot(h1, w2_ref[...], preferred_element_type=jnp.float32)
              + b2_ref[...])                                     # (1, 2)
    out_ref[0] = logits.astype(out_ref.dtype)


# ----------------------------- wrapper ---------------------------------------
def bert_gender_classifier_forward(params, input_ids, attention_mask,
                                   token_type_ids=None):
    B, S = input_ids.shape
    if token_type_ids is None:
        token_type_ids = jnp.zeros((B, S), jnp.int32)

    ids3 = input_ids.astype(jnp.int32).reshape(B, S, 1)
    tt3 = token_type_ids.astype(jnp.int32).reshape(B, S, 1)
    mask3 = attention_mask.astype(jnp.float32).reshape(B, 1, S)
    pemb_s = params["pos_emb"][:S]                   # (S, H), static slice

    sp = params["layers"]                            # stacked (L, ...) weights
    cp = params["cls"]
    L = N_LAYERS

    def full(shape):
        n = len(shape)
        return pl.BlockSpec(shape, lambda b, n=n: (0,) * n)

    kern = functools.partial(_bert_forward_kernel,
                             scale=1.0 / math.sqrt(HEAD_DIM), eps=LN_EPS)

    logits = pl.pallas_call(
        kern,
        out_shape=jax.ShapeDtypeStruct((B, 1, 2), jnp.float32),
        grid=(B,),
        in_specs=[
            pl.BlockSpec((1, S, 1), lambda b: (b, 0, 0)),        # input_ids
            pl.BlockSpec((1, S, 1), lambda b: (b, 0, 0)),        # token_type
            pl.BlockSpec((1, 1, S), lambda b: (b, 0, 0)),        # attn mask
            full((VOCAB, HIDDEN)), full((S, HIDDEN)), full((TYPE_VOCAB, HIDDEN)),
            full((1, HIDDEN)), full((1, HIDDEN)),                # emb LN
            full((L, HIDDEN, 3 * HIDDEN)), full((L, 1, 3 * HIDDEN)),
            full((L, HIDDEN, HIDDEN)), full((L, 1, HIDDEN)),
            full((L, 1, HIDDEN)), full((L, 1, HIDDEN)),          # LN1
            full((L, HIDDEN, INTERMEDIATE)), full((L, 1, INTERMEDIATE)),
            full((L, INTERMEDIATE, HIDDEN)), full((L, 1, HIDDEN)),
            full((L, 1, HIDDEN)), full((L, 1, HIDDEN)),          # LN2
            full((HIDDEN, MLP_HID)), full((1, MLP_HID)),
            full((MLP_HID, 2)), full((1, 2)),
        ],
        out_specs=pl.BlockSpec((1, 1, 2), lambda b: (b, 0, 0)),
        compiler_params=pltpu.CompilerParams(
            dimension_semantics=("parallel",)),
    )(ids3, tt3, mask3,
      params["word_emb"], pemb_s, params["type_emb"],
      params["emb_ln_g"], params["emb_ln_b"],
      sp["wqkv"], sp["bqkv"], sp["wo"], sp["bo"],
      sp["ln1_g"], sp["ln1_b"],
      sp["wi"], sp["bi"], sp["wf"], sp["bf"],
      sp["ln2_g"], sp["ln2_b"],
      cp["w1"], cp["b1"], cp["w2"], cp["b2"])

    return logits.reshape(B, 2)                      # no LogSoftmax (matches ref)


# ----------------------------- parameter init -------------------------------
def init_params(key):
    keys = iter(jax.random.split(key, 128))

    def nrm(shape, scale=0.02):
        return (scale * jax.random.normal(next(keys), shape)).astype(jnp.float32)

    H, I = HIDDEN, INTERMEDIATE
    params = {
        "word_emb": nrm((VOCAB, H)),
        "pos_emb": nrm((MAX_POS, H)),
        "type_emb": nrm((TYPE_VOCAB, H)),
        "emb_ln_g": jnp.ones((1, H), jnp.float32),
        "emb_ln_b": jnp.zeros((1, H), jnp.float32),
    }

    layer_list = []
    for _ in range(N_LAYERS):
        wq = nrm((H, H)); bq = jnp.zeros((H,), jnp.float32)
        wk = nrm((H, H)); bk = jnp.zeros((H,), jnp.float32)
        wv = nrm((H, H)); bv = jnp.zeros((H,), jnp.float32)
        layer_list.append({
            # Q|K|V fused into one (H, 3H) weight -> single MXU push per layer.
            "wqkv": jnp.concatenate([wq, wk, wv], axis=1),
            "bqkv": jnp.concatenate([bq, bk, bv], axis=0).reshape(1, 3 * H),
            "wo": nrm((H, H)), "bo": jnp.zeros((1, H), jnp.float32),
            "ln1_g": jnp.ones((1, H), jnp.float32),
            "ln1_b": jnp.zeros((1, H), jnp.float32),
            "wi": nrm((H, I)), "bi": jnp.zeros((1, I), jnp.float32),
            "wf": nrm((I, H)), "bf": jnp.zeros((1, H), jnp.float32),
            "ln2_g": jnp.ones((1, H), jnp.float32),
            "ln2_b": jnp.zeros((1, H), jnp.float32),
        })
    # Stack per-layer params on a leading (L, ...) axis so the whole encoder
    # runs inside one pallas_call (weights indexed statically per layer).
    params["layers"] = {k: jnp.stack([lp[k] for lp in layer_list], axis=0)
                        for k in layer_list[0]}

    # ---- classifier: fold both eval-mode BatchNorm1d into the Linears ----
    bn1_mean = nrm((H,), 0.1)
    bn1_var = 1.0 + jnp.abs(nrm((H,), 0.1))
    bn1_g = jnp.ones((H,), jnp.float32)
    bn1_b = jnp.zeros((H,), jnp.float32)
    w1 = nrm((H, MLP_HID)); b1 = jnp.zeros((MLP_HID,), jnp.float32)
    bn2_mean = nrm((MLP_HID,), 0.1)
    bn2_var = 1.0 + jnp.abs(nrm((MLP_HID,), 0.1))
    bn2_g = jnp.ones((MLP_HID,), jnp.float32)
    bn2_b = jnp.zeros((MLP_HID,), jnp.float32)
    w2 = nrm((MLP_HID, 2)); b2 = jnp.zeros((2,), jnp.float32)

    a1 = bn1_g * lax.rsqrt(bn1_var + BN_EPS)        # BN1: y = x*a1 + d1
    d1 = bn1_b - bn1_mean * a1
    a2 = bn2_g * lax.rsqrt(bn2_var + BN_EPS)        # BN2: y = h*a2 + d2
    d2 = bn2_b - bn2_mean * a2
    w1_folded = (a1[:, None] * w1) * a2[None, :]    # BN1 -> Linear1 -> BN2
    b1_folded = (d1 @ w1 + b1) * a2 + d2
    params["cls"] = {"w1": w1_folded, "b1": b1_folded.reshape(1, MLP_HID),
                     "w2": w2, "b2": b2.reshape(1, 2)}
    return params


# ----------------------------------- main ------------------------------------
if __name__ == "__main__":
    key = jax.random.PRNGKey(0)
    k_param, k_ids = jax.random.split(key)

    params = init_params(k_param)

    B, S = 2, 8
    input_ids = jax.random.randint(k_ids, (B, S), 0, VOCAB, dtype=jnp.int32)
    attention_mask = jnp.ones((B, S), jnp.float32).at[1, 6:].set(0.0)

    fwd = jax.jit(bert_gender_classifier_forward)
    logits = fwd(params, input_ids, attention_mask)
    logits = jax.block_until_ready(logits)

    assert logits.shape == (B, 2) and logits.dtype == jnp.float32
    assert bool(jnp.all(jnp.isfinite(logits)))
    print("KERNEL_OK")
</pallas_src>

<mosaic_0001>
module attributes {stable_mosaic.version = 11 : i64} {
  func.func @_bert_forward_kernel(%arg0: i32, %arg1: memref<1x8x1xi32, #tpu.memory_space<vmem>>, %arg2: memref<1x8x1xi32, #tpu.memory_space<vmem>>, %arg3: memref<1x1x8xf32, #tpu.memory_space<vmem>>, %arg4: memref<50x32xf32, #tpu.memory_space<vmem>>, %arg5: memref<8x32xf32, #tpu.memory_space<vmem>>, %arg6: memref<2x32xf32, #tpu.memory_space<vmem>>, %arg7: memref<1x32xf32, #tpu.memory_space<vmem>>, %arg8: memref<1x32xf32, #tpu.memory_space<vmem>>, %arg9: memref<2x32x96xf32, #tpu.memory_space<vmem>>, %arg10: memref<2x1x96xf32, #tpu.memory_space<vmem>>, %arg11: memref<2x32x32xf32, #tpu.memory_space<vmem>>, %arg12: memref<2x1x32xf32, #tpu.memory_space<vmem>>, %arg13: memref<2x1x32xf32, #tpu.memory_space<vmem>>, %arg14: memref<2x1x32xf32, #tpu.memory_space<vmem>>, %arg15: memref<2x32x64xf32, #tpu.memory_space<vmem>>, %arg16: memref<2x1x64xf32, #tpu.memory_space<vmem>>, %arg17: memref<2x64x32xf32, #tpu.memory_space<vmem>>, %arg18: memref<2x1x32xf32, #tpu.memory_space<vmem>>, %arg19: memref<2x1x32xf32, #tpu.memory_space<vmem>>, %arg20: memref<2x1x32xf32, #tpu.memory_space<vmem>>, %arg21: memref<32x16xf32, #tpu.memory_space<vmem>>, %arg22: memref<1x16xf32, #tpu.memory_space<vmem>>, %arg23: memref<16x2xf32, #tpu.memory_space<vmem>>, %arg24: memref<1x2xf32, #tpu.memory_space<vmem>>, %arg25: memref<1x1x2xf32, #tpu.memory_space<vmem>>) attributes {dimension_semantics = [#tpu.dimension_semantics<parallel>], iteration_bounds = array<i64: 2>, scalar_prefetch = 0 : i64, scratch_operands = 0 : i64, tpu.core_type = #tpu.core_type<tc>, window_params = [{transform_indices = @transform_0, window_bounds = array<i64: 1, 8, 1>}, {transform_indices = @transform_1, window_bounds = array<i64: 1, 8, 1>}, {transform_indices = @transform_2, window_bounds = array<i64: 1, 1, 8>}, {pipeline_mode = #tpu.pipeline_mode<synchronous>, transform_indices = @transform_3, window_bounds = array<i64: 50, 32>}, {pipeline_mode = #tpu.pipeline_mode<synchronous>, transform_indices = @transform_4, window_bounds = array<i64: 8, 32>}, {pipeline_mode = #tpu.pipeline_mode<synchronous>, transform_indices = @transform_5, window_bounds = array<i64: 2, 32>}, {pipeline_mode = #tpu.pipeline_mode<synchronous>, transform_indices = @transform_6, window_bounds = array<i64: 1, 32>}, {pipeline_mode = #tpu.pipeline_mode<synchronous>, transform_indices = @transform_7, window_bounds = array<i64: 1, 32>}, {pipeline_mode = #tpu.pipeline_mode<synchronous>, transform_indices = @transform_8, window_bounds = array<i64: 2, 32, 96>}, {pipeline_mode = #tpu.pipeline_mode<synchronous>, transform_indices = @transform_9, window_bounds = array<i64: 2, 1, 96>}, {pipeline_mode = #tpu.pipeline_mode<synchronous>, transform_indices = @transform_10, window_bounds = array<i64: 2, 32, 32>}, {pipeline_mode = #tpu.pipeline_mode<synchronous>, transform_indices = @transform_11, window_bounds = array<i64: 2, 1, 32>}, {pipeline_mode = #tpu.pipeline_mode<synchronous>, transform_indices = @transform_12, window_bounds = array<i64: 2, 1, 32>}, {pipeline_mode = #tpu.pipeline_mode<synchronous>, transform_indices = @transform_13, window_bounds = array<i64: 2, 1, 32>}, {pipeline_mode = #tpu.pipeline_mode<synchronous>, transform_indices = @transform_14, window_bounds = array<i64: 2, 32, 64>}, {pipeline_mode = #tpu.pipeline_mode<synchronous>, transform_indices = @transform_15, window_bounds = array<i64: 2, 1, 64>}, {pipeline_mode = #tpu.pipeline_mode<synchronous>, transform_indices = @transform_16, window_bounds = array<i64: 2, 64, 32>}, {pipeline_mode = #tpu.pipeline_mode<synchronous>, transform_indices = @transform_17, window_bounds = array<i64: 2, 1, 32>}, {pipeline_mode = #tpu.pipeline_mode<synchronous>, transform_indices = @transform_18, window_bounds = array<i64: 2, 1, 32>}, {pipeline_mode = #tpu.pipeline_mode<synchronous>, transform_indices = @transform_19, window_bounds = array<i64: 2, 1, 32>}, {pipeline_mode = #tpu.pipeline_mode<synchronous>, transform_indices = @transform_20, window_bounds = array<i64: 32, 16>}, {pipeline_mode = #tpu.pipeline_mode<synchronous>, transform_indices = @transform_21, window_bounds = array<i64: 1, 16>}, {pipeline_mode = #tpu.pipeline_mode<synchronous>, transform_indices = @transform_22, window_bounds = array<i64: 16, 2>}, {pipeline_mode = #tpu.pipeline_mode<synchronous>, transform_indices = @transform_23, window_bounds = array<i64: 1, 2>}, {transform_indices = @transform_24, window_bounds = array<i64: 1, 1, 2>}]} {
    %c0 = arith.constant 0 : index
    %c0_0 = arith.constant 0 : index
    %c0_1 = arith.constant 0 : index
    %0 = vector.load %arg1[%c0, %c0_0, %c0_1] : memref<1x8x1xi32, #tpu.memory_space<vmem>>, vector<1x8x1xi32>
    %1 = vector.shape_cast %0 : vector<1x8x1xi32> to vector<8x1xi32>
    %c0_2 = arith.constant 0 : index
    %c0_3 = arith.constant 0 : index
    %c0_4 = arith.constant 0 : index
    %2 = vector.load %arg2[%c0_2, %c0_3, %c0_4] : memref<1x8x1xi32, #tpu.memory_space<vmem>>, vector<1x8x1xi32>
    %3 = vector.shape_cast %2 : vector<1x8x1xi32> to vector<8x1xi32>
    %4 = tpu.iota {dimensions = array<i32: 1>} : vector<8x50xi32>
    %5 = vector.broadcast %1 : vector<8x1xi32> to vector<8x50xi32>
    %6 = arith.cmpi eq, %5, %4 : vector<8x50xi32>
    %7 = arith.extui %6 : vector<8x50xi1> to vector<8x50xi32>
    %8 = arith.sitofp %7 : vector<8x50xi32> to vector<8x50xf32>
    %9 = tpu.iota {dimensions = array<i32: 1>} : vector<8x2xi32>
    %10 = vector.broadcast %3 : vector<8x1xi32> to vector<8x2xi32>
    %11 = arith.cmpi eq, %10, %9 : vector<8x2xi32>
    %12 = arith.extui %11 : vector<8x2xi1> to vector<8x2xi32>
    %13 = arith.sitofp %12 : vector<8x2xi32> to vector<8x2xf32>
    %c0_5 = arith.constant 0 : index
    %c0_6 = arith.constant 0 : index
    %14 = vector.load %arg4[%c0_5, %c0_6] : memref<50x32xf32, #tpu.memory_space<vmem>>, vector<50x32xf32>
    %cst = arith.constant dense<0.000000e+00> : vector<8x32xf32>
    %15 = tpu.matmul %8, %14, %cst {dimension_numbers = #tpu.dot_dimension_numbers<[1], [0], [0], [1], [0, 0, 1, 1], [], []>} : vector<8x50xf32>, vector<50x32xf32>, vector<8x32xf32> -> vector<8x32xf32>
    %c0_7 = arith.constant 0 : index
    %c0_8 = arith.constant 0 : index
    %16 = vector.load %arg6[%c0_7, %c0_8] : memref<2x32xf32, #tpu.memory_space<vmem>>, vector<2x32xf32>
    %cst_9 = arith.constant dense<0.000000e+00> : vector<8x32xf32>
    %17 = tpu.matmul %13, %16, %cst_9 {dimension_numbers = #tpu.dot_dimension_numbers<[1], [0], [0], [1], [0, 0, 1, 1], [], []>} : vector<8x2xf32>, vector<2x32xf32>, vector<8x32xf32> -> vector<8x32xf32>
    %18 = arith.addf %15, %17 : vector<8x32xf32>
    %c0_10 = arith.constant 0 : index
    %c0_11 = arith.constant 0 : index
    %19 = vector.load %arg5[%c0_10, %c0_11] : memref<8x32xf32, #tpu.memory_space<vmem>>, vector<8x32xf32>
    %20 = arith.addf %18, %19 : vector<8x32xf32>
    %c0_12 = arith.constant 0 : index
    %c0_13 = arith.constant 0 : index
    %21 = vector.load %arg7[%c0_12, %c0_13] : memref<1x32xf32, #tpu.memory_space<vmem>>, vector<1x32xf32>
    %c0_14 = arith.constant 0 : index
    %c0_15 = arith.constant 0 : index
    %22 = vector.load %arg8[%c0_14, %c0_15] : memref<1x32xf32, #tpu.memory_space<vmem>>, vector<1x32xf32>
    %cst_16 = arith.constant dense<0.000000e+00> : vector<8xf32>
    %23 = vector.multi_reduction <add>, %20, %cst_16 [1] : vector<8x32xf32> to vector<8xf32>
    %24 = vector.shape_cast %23 : vector<8xf32> to vector<8x1xf32>
    %cst_17 = arith.constant 3.200000e+01 : f32
    %25 = vector.broadcast %cst_17 : f32 to vector<8x1xf32>
    %26 = arith.divf %24, %25 : vector<8x1xf32>
    %27 = vector.broadcast %26 : vector<8x1xf32> to vector<8x32xf32>
    %28 = arith.subf %20, %27 : vector<8x32xf32>
    %29 = arith.mulf %28, %28 : vector<8x32xf32>
    %cst_18 = arith.constant dense<0.000000e+00> : vector<8xf32>
    %30 = vector.multi_reduction <add>, %29, %cst_18 [1] : vector<8x32xf32> to vector<8xf32>
    %31 = vector.shape_cast %30 : vector<8xf32> to vector<8x1xf32>
    %cst_19 = arith.constant 3.200000e+01 : f32
    %32 = vector.broadcast %cst_19 : f32 to vector<8x1xf32>
    %33 = arith.divf %31, %32 : vector<8x1xf32>
    %34 = vector.broadcast %26 : vector<8x1xf32> to vector<8x32xf32>
    %35 = arith.subf %20, %34 : vector<8x32xf32>
    %cst_20 = arith.constant 9.99999996E-13 : f32
    %36 = vector.broadcast %cst_20 : f32 to vector<8x1xf32>
    %37 = arith.addf %33, %36 : vector<8x1xf32>
    %38 = math.rsqrt %37 : vector<8x1xf32>
    %39 = vector.broadcast %38 : vector<8x1xf32> to vector<8x32xf32>
    %40 = arith.mulf %35, %39 : vector<8x32xf32>
    %41 = vector.broadcast %21 : vector<1x32xf32> to vector<8x32xf32>
    %42 = arith.mulf %40, %41 : vector<8x32xf32>
    %43 = vector.broadcast %22 : vector<1x32xf32> to vector<8x32xf32>
    %44 = arith.addf %42, %43 : vector<8x32xf32>
    %c0_21 = arith.constant 0 : index
    %c0_22 = arith.constant 0 : index
    %c0_23 = arith.constant 0 : index
    %45 = vector.load %arg3[%c0_21, %c0_22, %c0_23] : memref<1x1x8xf32, #tpu.memory_space<vmem>>, vector<1x1x8xf32>
    %46 = vector.shape_cast %45 : vector<1x1x8xf32> to vector<1x8xf32>
    %cst_24 = arith.constant 1.000000e+00 : f32
    %47 = vector.broadcast %cst_24 : f32 to vector<1x8xf32>
    %48 = arith.subf %47, %46 : vector<1x8xf32>
    %cst_25 = arith.constant -1.000000e+04 : f32
    %49 = vector.broadcast %cst_25 : f32 to vector<1x8xf32>
    %50 = arith.mulf %48, %49 : vector<1x8xf32>
    %c0_26 = arith.constant 0 : index
    %c0_27 = arith.constant 0 : index
    %c0_28 = arith.constant 0 : index
    %51 = vector.load %arg9[%c0_26, %c0_27, %c0_28] : memref<2x32x96xf32, #tpu.memory_space<vmem>>, vector<1x32x96xf32>
    %52 = vector.shape_cast %51 : vector<1x32x96xf32> to vector<32x96xf32>
    %c0_29 = arith.constant 0 : index
    %c0_30 = arith.constant 0 : index
    %c0_31 = arith.constant 0 : index
    %53 = vector.load %arg11[%c0_29, %c0_30, %c0_31] : memref<2x32x32xf32, #tpu.memory_space<vmem>>, vector<1x32x32xf32>
    %54 = vector.shape_cast %53 : vector<1x32x32xf32> to vector<32x32xf32>
    %cst_32 = arith.constant dense<0.000000e+00> : vector<8x96xf32>
    %55 = tpu.matmul %44, %52, %cst_32 {dimension_numbers = #tpu.dot_dimension_numbers<[1], [0], [0], [1], [0, 0, 1, 1], [], []>} : vector<8x32xf32>, vector<32x96xf32>, vector<8x96xf32> -> vector<8x96xf32>
    %c0_33 = arith.constant 0 : index
    %c0_34 = arith.constant 0 : index
    %c0_35 = arith.constant 0 : index
    %56 = vector.load %arg10[%c0_33, %c0_34, %c0_35] : memref<2x1x96xf32, #tpu.memory_space<vmem>>, vector<1x1x96xf32>
    %57 = vector.shape_cast %56 : vector<1x1x96xf32> to vector<1x96xf32>
    %58 = vector.broadcast %57 : vector<1x96xf32> to vector<8x96xf32>
    %59 = arith.addf %55, %58 : vector<8x96xf32>
    %cst_36 = arith.constant 0.000000e+00 : f32
    %60 = vector.broadcast %cst_36 : f32 to vector<8x32xf32>
    %61 = vector.extract_strided_slice %59 {offsets = [0, 0], sizes = [8, 8], strides = [1, 1]} : vector<8x96xf32> to vector<8x8xf32>
    %62 = vector.extract_strided_slice %59 {offsets = [0, 32], sizes = [8, 8], strides = [1, 1]} : vector<8x96xf32> to vector<8x8xf32>
    %63 = vector.extract_strided_slice %59 {offsets = [0, 64], sizes = [8, 8], strides = [1, 1]} : vector<8x96xf32> to vector<8x8xf32>
    %cst_37 = arith.constant dense<0.000000e+00> : vector<8x8xf32>
    %64 = tpu.matmul %61, %62, %cst_37 {dimension_numbers = #tpu.dot_dimension_numbers<[1], [1], [0], [0], [0, 0, 1, 0], [], []>} : vector<8x8xf32>, vector<8x8xf32>, vector<8x8xf32> -> vector<8x8xf32>
    %cst_38 = arith.constant 0.353553385 : f32
    %65 = vector.broadcast %cst_38 : f32 to vector<8x8xf32>
    %66 = arith.mulf %64, %65 : vector<8x8xf32>
    %67 = vector.broadcast %50 : vector<1x8xf32> to vector<8x8xf32>
    %68 = arith.addf %66, %67 : vector<8x8xf32>
    %cst_39 = arith.constant dense<0xFF800000> : vector<8xf32>
    %69 = vector.multi_reduction <maximumf>, %68, %cst_39 [1] : vector<8x8xf32> to vector<8xf32>
    %70 = vector.shape_cast %69 : vector<8xf32> to vector<8x1xf32>
    %71 = vector.broadcast %70 : vector<8x1xf32> to vector<8x8xf32>
    %72 = arith.subf %68, %71 : vector<8x8xf32>
    %73 = math.exp %72 : vector<8x8xf32>
    %cst_40 = arith.constant dense<0.000000e+00> : vector<8xf32>
    %74 = vector.multi_reduction <add>, %73, %cst_40 [1] : vector<8x8xf32> to vector<8xf32>
    %75 = vector.shape_cast %74 : vector<8xf32> to vector<8x1xf32>
    %76 = tpu.reciprocal %75 {approx = true} : vector<8x1xf32> -> vector<8x1xf32>
    %77 = vector.broadcast %76 : vector<8x1xf32> to vector<8x8xf32>
    %78 = arith.mulf %73, %77 : vector<8x8xf32>
    %cst_41 = arith.constant dense<0.000000e+00> : vector<8x8xf32>
    %79 = tpu.matmul %78, %63, %cst_41 {dimension_numbers = #tpu.dot_dimension_numbers<[1], [0], [0], [1], [0, 0, 1, 1], [], []>} : vector<8x8xf32>, vector<8x8xf32>, vector<8x8xf32> -> vector<8x8xf32>
    %80 = vector.extract_strided_slice %54 {offsets = [0, 0], sizes = [8, 32], strides = [1, 1]} : vector<32x32xf32> to vector<8x32xf32>
    %cst_42 = arith.constant dense<0.000000e+00> : vector<8x32xf32>
    %81 = tpu.matmul %79, %80, %cst_42 {dimension_numbers = #tpu.dot_dimension_numbers<[1], [0], [0], [1], [0, 0, 1, 1], [], []>} : vector<8x8xf32>, vector<8x32xf32>, vector<8x32xf32> -> vector<8x32xf32>
    %82 = arith.addf %60, %81 : vector<8x32xf32>
    %83 = vector.extract_strided_slice %59 {offsets = [0, 8], sizes = [8, 8], strides = [1, 1]} : vector<8x96xf32> to vector<8x8xf32>
    %84 = vector.extract_strided_slice %59 {offsets = [0, 40], sizes = [8, 8], strides = [1, 1]} : vector<8x96xf32> to vector<8x8xf32>
    %85 = vector.extract_strided_slice %59 {offsets = [0, 72], sizes = [8, 8], strides = [1, 1]} : vector<8x96xf32> to vector<8x8xf32>
    %cst_43 = arith.constant dense<0.000000e+00> : vector<8x8xf32>
    %86 = tpu.matmul %83, %84, %cst_43 {dimension_numbers = #tpu.dot_dimension_numbers<[1], [1], [0], [0], [0, 0, 1, 0], [], []>} : vector<8x8xf32>, vector<8x8xf32>, vector<8x8xf32> -> vector<8x8xf32>
    %cst_44 = arith.constant 0.353553385 : f32
    %87 = vector.broadcast %cst_44 : f32 to vector<8x8xf32>
    %88 = arith.mulf %86, %87 : vector<8x8xf32>
    %89 = vector.broadcast %50 : vector<1x8xf32> to vector<8x8xf32>
    %90 = arith.addf %88, %89 : vector<8x8xf32>
    %cst_45 = arith.constant dense<0xFF800000> : vector<8xf32>
    %91 = vector.multi_reduction <maximumf>, %90, %cst_45 [1] : vector<8x8xf32> to vector<8xf32>
    %92 = vector.shape_cast %91 : vector<8xf32> to vector<8x1xf32>
    %93 = vector.broadcast %92 : vector<8x1xf32> to vector<8x8xf32>
    %94 = arith.subf %90, %93 : vector<8x8xf32>
    %95 = math.exp %94 : vector<8x8xf32>
    %cst_46 = arith.constant dense<0.000000e+00> : vector<8xf32>
    %96 = vector.multi_reduction <add>, %95, %cst_46 [1] : vector<8x8xf32> to vector<8xf32>
    %97 = vector.shape_cast %96 : vector<8xf32> to vector<8x1xf32>
    %98 = tpu.reciprocal %97 {approx = true} : vector<8x1xf32> -> vector<8x1xf32>
    %99 = vector.broadcast %98 : vector<8x1xf32> to vector<8x8xf32>
    %100 = arith.mulf %95, %99 : vector<8x8xf32>
    %cst_47 = arith.constant dense<0.000000e+00> : vector<8x8xf32>
    %101 = tpu.matmul %100, %85, %cst_47 {dimension_numbers = #tpu.dot_dimension_numbers<[1], [0], [0], [1], [0, 0, 1, 1], [], []>} : vector<8x8xf32>, vector<8x8xf32>, vector<8x8xf32> -> vector<8x8xf32>
    %102 = vector.extract_strided_slice %54 {offsets = [8, 0], sizes = [8, 32], strides = [1, 1]} : vector<32x32xf32> to vector<8x32xf32>
    %cst_48 = arith.constant dense<0.000000e+00> : vector<8x32xf32>
    %103 = tpu.matmul %101, %102, %cst_48 {dimension_numbers = #tpu.dot_dimension_numbers<[1], [0], [0], [1], [0, 0, 1, 1], [], []>} : vector<8x8xf32>, vector<8x32xf32>, vector<8x32xf32> -> vector<8x32xf32>
    %104 = arith.addf %82, %103 : vector<8x32xf32>
    %105 = vector.extract_strided_slice %59 {offsets = [0, 16], sizes = [8, 8], strides = [1, 1]} : vector<8x96xf32> to vector<8x8xf32>
    %106 = vector.extract_strided_slice %59 {offsets = [0, 48], sizes = [8, 8], strides = [1, 1]} : vector<8x96xf32> to vector<8x8xf32>
    %107 = vector.extract_strided_slice %59 {offsets = [0, 80], sizes = [8, 8], strides = [1, 1]} : vector<8x96xf32> to vector<8x8xf32>
    %cst_49 = arith.constant dense<0.000000e+00> : vector<8x8xf32>
    %108 = tpu.matmul %105, %106, %cst_49 {dimension_numbers = #tpu.dot_dimension_numbers<[1], [1], [0], [0], [0, 0, 1, 0], [], []>} : vector<8x8xf32>, vector<8x8xf32>, vector<8x8xf32> -> vector<8x8xf32>
    %cst_50 = arith.constant 0.353553385 : f32
    %109 = vector.broadcast %cst_50 : f32 to vector<8x8xf32>
    %110 = arith.mulf %108, %109 : vector<8x8xf32>
    %111 = vector.broadcast %50 : vector<1x8xf32> to vector<8x8xf32>
    %112 = arith.addf %110, %111 : vector<8x8xf32>
    %cst_51 = arith.constant dense<0xFF800000> : vector<8xf32>
    %113 = vector.multi_reduction <maximumf>, %112, %cst_51 [1] : vector<8x8xf32> to vector<8xf32>
    %114 = vector.shape_cast %113 : vector<8xf32> to vector<8x1xf32>
    %115 = vector.broadcast %114 : vector<8x1xf32> to vector<8x8xf32>
    %116 = arith.subf %112, %115 : vector<8x8xf32>
    %117 = math.exp %116 : vector<8x8xf32>
    %cst_52 = arith.constant dense<0.000000e+00> : vector<8xf32>
    %118 = vector.multi_reduction <add>, %117, %cst_52 [1] : vector<8x8xf32> to vector<8xf32>
    %119 = vector.shape_cast %118 : vector<8xf32> to vector<8x1xf32>
    %120 = tpu.reciprocal %119 {approx = true} : vector<8x1xf32> -> vector<8x1xf32>
    %121 = vector.broadcast %120 : vector<8x1xf32> to vector<8x8xf32>
    %122 = arith.mulf %117, %121 : vector<8x8xf32>
    %cst_53 = arith.constant dense<0.000000e+00> : vector<8x8xf32>
    %123 = tpu.matmul %122, %107, %cst_53 {dimension_numbers = #tpu.dot_dimension_numbers<[1], [0], [0], [1], [0, 0, 1, 1], [], []>} : vector<8x8xf32>, vector<8x8xf32>, vector<8x8xf32> -> vector<8x8xf32>
    %124 = vector.extract_strided_slice %54 {offsets = [16, 0], sizes = [8, 32], strides = [1, 1]} : vector<32x32xf32> to vector<8x32xf32>
    %cst_54 = arith.constant dense<0.000000e+00> : vector<8x32xf32>
    %125 = tpu.matmul %123, %124, %cst_54 {dimension_numbers = #tpu.dot_dimension_numbers<[1], [0], [0], [1], [0, 0, 1, 1], [], []>} : vector<8x8xf32>, vector<8x32xf32>, vector<8x32xf32> -> vector<8x32xf32>
    %126 = arith.addf %104, %125 : vector<8x32xf32>
    %127 = vector.extract_strided_slice %59 {offsets = [0, 24], sizes = [8, 8], strides = [1, 1]} : vector<8x96xf32> to vector<8x8xf32>
    %128 = vector.extract_strided_slice %59 {offsets = [0, 56], sizes = [8, 8], strides = [1, 1]} : vector<8x96xf32> to vector<8x8xf32>
    %129 = vector.extract_strided_slice %59 {offsets = [0, 88], sizes = [8, 8], strides = [1, 1]} : vector<8x96xf32> to vector<8x8xf32>
    %cst_55 = arith.constant dense<0.000000e+00> : vector<8x8xf32>
    %130 = tpu.matmul %127, %128, %cst_55 {dimension_numbers = #tpu.dot_dimension_numbers<[1], [1], [0], [0], [0, 0, 1, 0], [], []>} : vector<8x8xf32>, vector<8x8xf32>, vector<8x8xf32> -> vector<8x8xf32>
    %cst_56 = arith.constant 0.353553385 : f32
    %131 = vector.broadcast %cst_56 : f32 to vector<8x8xf32>
    %132 = arith.mulf %130, %131 : vector<8x8xf32>
    %133 = vector.broadcast %50 : vector<1x8xf32> to vector<8x8xf32>
    %134 = arith.addf %132, %133 : vector<8x8xf32>
    %cst_57 = arith.constant dense<0xFF800000> : vector<8xf32>
    %135 = vector.multi_reduction <maximumf>, %134, %cst_57 [1] : vector<8x8xf32> to vector<8xf32>
    %136 = vector.shape_cast %135 : vector<8xf32> to vector<8x1xf32>
    %137 = vector.broadcast %136 : vector<8x1xf32> to vector<8x8xf32>
    %138 = arith.subf %134, %137 : vector<8x8xf32>
    %139 = math.exp %138 : vector<8x8xf32>
    %cst_58 = arith.constant dense<0.000000e+00> : vector<8xf32>
    %140 = vector.multi_reduction <add>, %139, %cst_58 [1] : vector<8x8xf32> to vector<8xf32>
    %141 = vector.shape_cast %140 : vector<8xf32> to vector<8x1xf32>
    %142 = tpu.reciprocal %141 {approx = true} : vector<8x1xf32> -> vector<8x1xf32>
    %143 = vector.broadcast %142 : vector<8x1xf32> to vector<8x8xf32>
    %144 = arith.mulf %139, %143 : vector<8x8xf32>
    %cst_59 = arith.constant dense<0.000000e+00> : vector<8x8xf32>
    %145 = tpu.matmul %144, %129, %cst_59 {dimension_numbers = #tpu.dot_dimension_numbers<[1], [0], [0], [1], [0, 0, 1, 1], [], []>} : vector<8x8xf32>, vector<8x8xf32>, vector<8x8xf32> -> vector<8x8xf32>
    %146 = vector.extract_strided_slice %54 {offsets = [24, 0], sizes = [8, 32], strides = [1, 1]} : vector<32x32xf32> to vector<8x32xf32>
    %cst_60 = arith.constant dense<0.000000e+00> : vector<8x32xf32>
    %147 = tpu.matmul %145, %146, %cst_60 {dimension_numbers = #tpu.dot_dimension_numbers<[1], [0], [0], [1], [0, 0, 1, 1], [], []>} : vector<8x8xf32>, vector<8x32xf32>, vector<8x32xf32> -> vector<8x32xf32>
    %148 = arith.addf %126, %147 : vector<8x32xf32>
    %c0_61 = arith.constant 0 : index
    %c0_62 = arith.constant 0 : index
    %c0_63 = arith.constant 0 : index
    %149 = vector.load %arg12[%c0_61, %c0_62, %c0_63] : memref<2x1x32xf32, #tpu.memory_space<vmem>>, vector<1x1x32xf32>
    %150 = vector.shape_cast %149 : vector<1x1x32xf32> to vector<1x32xf32>
    %151 = vector.broadcast %150 : vector<1x32xf32> to vector<8x32xf32>
    %152 = arith.addf %148, %151 : vector<8x32xf32>
    %153 = arith.addf %152, %44 : vector<8x32xf32>
    %c0_64 = arith.constant 0 : index
    %c0_65 = arith.constant 0 : index
    %c0_66 = arith.constant 0 : index
    %154 = vector.load %arg13[%c0_64, %c0_65, %c0_66] : memref<2x1x32xf32, #tpu.memory_space<vmem>>, vector<1x1x32xf32>
    %155 = vector.shape_cast %154 : vector<1x1x32xf32> to vector<1x32xf32>
    %c0_67 = arith.constant 0 : index
    %c0_68 = arith.constant 0 : index
    %c0_69 = arith.constant 0 : index
    %156 = vector.load %arg14[%c0_67, %c0_68, %c0_69] : memref<2x1x32xf32, #tpu.memory_space<vmem>>, vector<1x1x32xf32>
    %157 = vector.shape_cast %156 : vector<1x1x32xf32> to vector<1x32xf32>
    %cst_70 = arith.constant dense<0.000000e+00> : vector<8xf32>
    %158 = vector.multi_reduction <add>, %153, %cst_70 [1] : vector<8x32xf32> to vector<8xf32>
    %159 = vector.shape_cast %158 : vector<8xf32> to vector<8x1xf32>
    %cst_71 = arith.constant 3.200000e+01 : f32
    %160 = vector.broadcast %cst_71 : f32 to vector<8x1xf32>
    %161 = arith.divf %159, %160 : vector<8x1xf32>
    %162 = vector.broadcast %161 : vector<8x1xf32> to vector<8x32xf32>
    %163 = arith.subf %153, %162 : vector<8x32xf32>
    %164 = arith.mulf %163, %163 : vector<8x32xf32>
    %cst_72 = arith.constant dense<0.000000e+00> : vector<8xf32>
    %165 = vector.multi_reduction <add>, %164, %cst_72 [1] : vector<8x32xf32> to vector<8xf32>
    %166 = vector.shape_cast %165 : vector<8xf32> to vector<8x1xf32>
    %cst_73 = arith.constant 3.200000e+01 : f32
    %167 = vector.broadcast %cst_73 : f32 to vector<8x1xf32>
    %168 = arith.divf %166, %167 : vector<8x1xf32>
    %169 = vector.broadcast %161 : vector<8x1xf32> to vector<8x32xf32>
    %170 = arith.subf %153, %169 : vector<8x32xf32>
    %cst_74 = arith.constant 9.99999996E-13 : f32
    %171 = vector.broadcast %cst_74 : f32 to vector<8x1xf32>
    %172 = arith.addf %168, %171 : vector<8x1xf32>
    %173 = math.rsqrt %172 : vector<8x1xf32>
    %174 = vector.broadcast %173 : vector<8x1xf32> to vector<8x32xf32>
    %175 = arith.mulf %170, %174 : vector<8x32xf32>
    %176 = vector.broadcast %155 : vector<1x32xf32> to vector<8x32xf32>
    %177 = arith.mulf %175, %176 : vector<8x32xf32>
    %178 = vector.broadcast %157 : vector<1x32xf32> to vector<8x32xf32>
    %179 = arith.addf %177, %178 : vector<8x32xf32>
    %c0_75 = arith.constant 0 : index
    %c0_76 = arith.constant 0 : index
    %c0_77 = arith.constant 0 : index
    %180 = vector.load %arg15[%c0_75, %c0_76, %c0_77] : memref<2x32x64xf32, #tpu.memory_space<vmem>>, vector<1x32x64xf32>
    %181 = vector.shape_cast %180 : vector<1x32x64xf32> to vector<32x64xf32>
    %cst_78 = arith.constant dense<0.000000e+00> : vector<8x64xf32>
    %182 = tpu.matmul %179, %181, %cst_78 {dimension_numbers = #tpu.dot_dimension_numbers<[1], [0], [0], [1], [0, 0, 1, 1], [], []>} : vector<8x32xf32>, vector<32x64xf32>, vector<8x64xf32> -> vector<8x64xf32>
    %c0_79 = arith.constant 0 : index
    %c0_80 = arith.constant 0 : index
    %c0_81 = arith.constant 0 : index
    %183 = vector.load %arg16[%c0_79, %c0_80, %c0_81] : memref<2x1x64xf32, #tpu.memory_space<vmem>>, vector<1x1x64xf32>
    %184 = vector.shape_cast %183 : vector<1x1x64xf32> to vector<1x64xf32>
    %185 = vector.broadcast %184 : vector<1x64xf32> to vector<8x64xf32>
    %186 = arith.addf %182, %185 : vector<8x64xf32>
    %cst_82 = arith.constant 5.000000e-01 : f32
    %187 = vector.broadcast %cst_82 : f32 to vector<8x64xf32>
    %188 = arith.mulf %187, %186 : vector<8x64xf32>
    %cst_83 = arith.constant 4.471500e-02 : f32
    %189 = vector.broadcast %cst_83 : f32 to vector<8x64xf32>
    %190 = arith.mulf %189, %186 : vector<8x64xf32>
    %191 = arith.mulf %190, %186 : vector<8x64xf32>
    %192 = arith.mulf %191, %186 : vector<8x64xf32>
    %193 = arith.addf %186, %192 : vector<8x64xf32>
    %cst_84 = arith.constant 0.797884583 : f32
    %194 = vector.broadcast %cst_84 : f32 to vector<8x64xf32>
    %195 = arith.mulf %194, %193 : vector<8x64xf32>
    %196 = math.tanh %195 : vector<8x64xf32>
    %cst_85 = arith.constant 1.000000e+00 : f32
    %197 = vector.broadcast %cst_85 : f32 to vector<8x64xf32>
    %198 = arith.addf %197, %196 : vector<8x64xf32>
    %199 = arith.mulf %188, %198 : vector<8x64xf32>
    %c0_86 = arith.constant 0 : index
    %c0_87 = arith.constant 0 : index
    %c0_88 = arith.constant 0 : index
    %200 = vector.load %arg17[%c0_86, %c0_87, %c0_88] : memref<2x64x32xf32, #tpu.memory_space<vmem>>, vector<1x64x32xf32>
    %201 = vector.shape_cast %200 : vector<1x64x32xf32> to vector<64x32xf32>
    %cst_89 = arith.constant dense<0.000000e+00> : vector<8x32xf32>
    %202 = tpu.matmul %199, %201, %cst_89 {dimension_numbers = #tpu.dot_dimension_numbers<[1], [0], [0], [1], [0, 0, 1, 1], [], []>} : vector<8x64xf32>, vector<64x32xf32>, vector<8x32xf32> -> vector<8x32xf32>
    %c0_90 = arith.constant 0 : index
    %c0_91 = arith.constant 0 : index
    %c0_92 = arith.constant 0 : index
    %203 = vector.load %arg18[%c0_90, %c0_91, %c0_92] : memref<2x1x32xf32, #tpu.memory_space<vmem>>, vector<1x1x32xf32>
    %204 = vector.shape_cast %203 : vector<1x1x32xf32> to vector<1x32xf32>
    %205 = vector.broadcast %204 : vector<1x32xf32> to vector<8x32xf32>
    %206 = arith.addf %202, %205 : vector<8x32xf32>
    %207 = arith.addf %206, %179 : vector<8x32xf32>
    %c0_93 = arith.constant 0 : index
    %c0_94 = arith.constant 0 : index
    %c0_95 = arith.constant 0 : index
    %208 = vector.load %arg19[%c0_93, %c0_94, %c0_95] : memref<2x1x32xf32, #tpu.memory_space<vmem>>, vector<1x1x32xf32>
    %209 = vector.shape_cast %208 : vector<1x1x32xf32> to vector<1x32xf32>
    %c0_96 = arith.constant 0 : index
    %c0_97 = arith.constant 0 : index
    %c0_98 = arith.constant 0 : index
    %210 = vector.load %arg20[%c0_96, %c0_97, %c0_98] : memref<2x1x32xf32, #tpu.memory_space<vmem>>, vector<1x1x32xf32>
    %211 = vector.shape_cast %210 : vector<1x1x32xf32> to vector<1x32xf32>
    %cst_99 = arith.constant dense<0.000000e+00> : vector<8xf32>
    %212 = vector.multi_reduction <add>, %207, %cst_99 [1] : vector<8x32xf32> to vector<8xf32>
    %213 = vector.shape_cast %212 : vector<8xf32> to vector<8x1xf32>
    %cst_100 = arith.constant 3.200000e+01 : f32
    %214 = vector.broadcast %cst_100 : f32 to vector<8x1xf32>
    %215 = arith.divf %213, %214 : vector<8x1xf32>
    %216 = vector.broadcast %215 : vector<8x1xf32> to vector<8x32xf32>
    %217 = arith.subf %207, %216 : vector<8x32xf32>
    %218 = arith.mulf %217, %217 : vector<8x32xf32>
    %cst_101 = arith.constant dense<0.000000e+00> : vector<8xf32>
    %219 = vector.multi_reduction <add>, %218, %cst_101 [1] : vector<8x32xf32> to vector<8xf32>
    %220 = vector.shape_cast %219 : vector<8xf32> to vector<8x1xf32>
    %cst_102 = arith.constant 3.200000e+01 : f32
    %221 = vector.broadcast %cst_102 : f32 to vector<8x1xf32>
    %222 = arith.divf %220, %221 : vector<8x1xf32>
    %223 = vector.broadcast %215 : vector<8x1xf32> to vector<8x32xf32>
    %224 = arith.subf %207, %223 : vector<8x32xf32>
    %cst_103 = arith.constant 9.99999996E-13 : f32
    %225 = vector.broadcast %cst_103 : f32 to vector<8x1xf32>
    %226 = arith.addf %222, %225 : vector<8x1xf32>
    %227 = math.rsqrt %226 : vector<8x1xf32>
    %228 = vector.broadcast %227 : vector<8x1xf32> to vector<8x32xf32>
    %229 = arith.mulf %224, %228 : vector<8x32xf32>
    %230 = vector.broadcast %209 : vector<1x32xf32> to vector<8x32xf32>
    %231 = arith.mulf %229, %230 : vector<8x32xf32>
    %232 = vector.broadcast %211 : vector<1x32xf32> to vector<8x32xf32>
    %233 = arith.addf %231, %232 : vector<8x32xf32>
    %c1 = arith.constant 1 : index
    %c0_104 = arith.constant 0 : index
    %c0_105 = arith.constant 0 : index
    %234 = vector.load %arg9[%c1, %c0_104, %c0_105] : memref<2x32x96xf32, #tpu.memory_space<vmem>>, vector<1x32x96xf32>
    %235 = vector.shape_cast %234 : vector<1x32x96xf32> to vector<32x96xf32>
    %c1_106 = arith.constant 1 : index
    %c0_107 = arith.constant 0 : index
    %c0_108 = arith.constant 0 : index
    %236 = vector.load %arg11[%c1_106, %c0_107, %c0_108] : memref<2x32x32xf32, #tpu.memory_space<vmem>>, vector<1x32x32xf32>
    %237 = vector.shape_cast %236 : vector<1x32x32xf32> to vector<32x32xf32>
    %cst_109 = arith.constant dense<0.000000e+00> : vector<8x96xf32>
    %238 = tpu.matmul %233, %235, %cst_109 {dimension_numbers = #tpu.dot_dimension_numbers<[1], [0], [0], [1], [0, 0, 1, 1], [], []>} : vector<8x32xf32>, vector<32x96xf32>, vector<8x96xf32> -> vector<8x96xf32>
    %c1_110 = arith.constant 1 : index
    %c0_111 = arith.constant 0 : index
    %c0_112 = arith.constant 0 : index
    %239 = vector.load %arg10[%c1_110, %c0_111, %c0_112] : memref<2x1x96xf32, #tpu.memory_space<vmem>>, vector<1x1x96xf32>
    %240 = vector.shape_cast %239 : vector<1x1x96xf32> to vector<1x96xf32>
    %241 = vector.broadcast %240 : vector<1x96xf32> to vector<8x96xf32>
    %242 = arith.addf %238, %241 : vector<8x96xf32>
    %cst_113 = arith.constant 0.000000e+00 : f32
    %243 = vector.broadcast %cst_113 : f32 to vector<8x32xf32>
    %244 = vector.extract_strided_slice %242 {offsets = [0, 0], sizes = [8, 8], strides = [1, 1]} : vector<8x96xf32> to vector<8x8xf32>
    %245 = vector.extract_strided_slice %242 {offsets = [0, 32], sizes = [8, 8], strides = [1, 1]} : vector<8x96xf32> to vector<8x8xf32>
    %246 = vector.extract_strided_slice %242 {offsets = [0, 64], sizes = [8, 8], strides = [1, 1]} : vector<8x96xf32> to vector<8x8xf32>
    %cst_114 = arith.constant dense<0.000000e+00> : vector<8x8xf32>
    %247 = tpu.matmul %244, %245, %cst_114 {dimension_numbers = #tpu.dot_dimension_numbers<[1], [1], [0], [0], [0, 0, 1, 0], [], []>} : vector<8x8xf32>, vector<8x8xf32>, vector<8x8xf32> -> vector<8x8xf32>
    %cst_115 = arith.constant 0.353553385 : f32
    %248 = vector.broadcast %cst_115 : f32 to vector<8x8xf32>
    %249 = arith.mulf %247, %248 : vector<8x8xf32>
    %250 = vector.broadcast %50 : vector<1x8xf32> to vector<8x8xf32>
    %251 = arith.addf %249, %250 : vector<8x8xf32>
    %cst_116 = arith.constant dense<0xFF800000> : vector<8xf32>
    %252 = vector.multi_reduction <maximumf>, %251, %cst_116 [1] : vector<8x8xf32> to vector<8xf32>
    %253 = vector.shape_cast %252 : vector<8xf32> to vector<8x1xf32>
    %254 = vector.broadcast %253 : vector<8x1xf32> to vector<8x8xf32>
    %255 = arith.subf %251, %254 : vector<8x8xf32>
    %256 = math.exp %255 : vector<8x8xf32>
    %cst_117 = arith.constant dense<0.000000e+00> : vector<8xf32>
    %257 = vector.multi_reduction <add>, %256, %cst_117 [1] : vector<8x8xf32> to vector<8xf32>
    %258 = vector.shape_cast %257 : vector<8xf32> to vector<8x1xf32>
    %259 = tpu.reciprocal %258 {approx = true} : vector<8x1xf32> -> vector<8x1xf32>
    %260 = vector.broadcast %259 : vector<8x1xf32> to vector<8x8xf32>
    %261 = arith.mulf %256, %260 : vector<8x8xf32>
    %cst_118 = arith.constant dense<0.000000e+00> : vector<8x8xf32>
    %262 = tpu.matmul %261, %246, %cst_118 {dimension_numbers = #tpu.dot_dimension_numbers<[1], [0], [0], [1], [0, 0, 1, 1], [], []>} : vector<8x8xf32>, vector<8x8xf32>, vector<8x8xf32> -> vector<8x8xf32>
    %263 = vector.extract_strided_slice %237 {offsets = [0, 0], sizes = [8, 32], strides = [1, 1]} : vector<32x32xf32> to vector<8x32xf32>
    %cst_119 = arith.constant dense<0.000000e+00> : vector<8x32xf32>
    %264 = tpu.matmul %262, %263, %cst_119 {dimension_numbers = #tpu.dot_dimension_numbers<[1], [0], [0], [1], [0, 0, 1, 1], [], []>} : vector<8x8xf32>, vector<8x32xf32>, vector<8x32xf32> -> vector<8x32xf32>
    %265 = arith.addf %243, %264 : vector<8x32xf32>
    %266 = vector.extract_strided_slice %242 {offsets = [0, 8], sizes = [8, 8], strides = [1, 1]} : vector<8x96xf32> to vector<8x8xf32>
    %267 = vector.extract_strided_slice %242 {offsets = [0, 40], sizes = [8, 8], strides = [1, 1]} : vector<8x96xf32> to vector<8x8xf32>
    %268 = vector.extract_strided_slice %242 {offsets = [0, 72], sizes = [8, 8], strides = [1, 1]} : vector<8x96xf32> to vector<8x8xf32>
    %cst_120 = arith.constant dense<0.000000e+00> : vector<8x8xf32>
    %269 = tpu.matmul %266, %267, %cst_120 {dimension_numbers = #tpu.dot_dimension_numbers<[1], [1], [0], [0], [0, 0, 1, 0], [], []>} : vector<8x8xf32>, vector<8x8xf32>, vector<8x8xf32> -> vector<8x8xf32>
    %cst_121 = arith.constant 0.353553385 : f32
    %270 = vector.broadcast %cst_121 : f32 to vector<8x8xf32>
    %271 = arith.mulf %269, %270 : vector<8x8xf32>
    %272 = vector.broadcast %50 : vector<1x8xf32> to vector<8x8xf32>
    %273 = arith.addf %271, %272 : vector<8x8xf32>
    %cst_122 = arith.constant dense<0xFF800000> : vector<8xf32>
    %274 = vector.multi_reduction <maximumf>, %273, %cst_122 [1] : vector<8x8xf32> to vector<8xf32>
    %275 = vector.shape_cast %274 : vector<8xf32> to vector<8x1xf32>
    %276 = vector.broadcast %275 : vector<8x1xf32> to vector<8x8xf32>
    %277 = arith.subf %273, %276 : vector<8x8xf32>
    %278 = math.exp %277 : vector<8x8xf32>
    %cst_123 = arith.constant dense<0.000000e+00> : vector<8xf32>
    %279 = vector.multi_reduction <add>, %278, %cst_123 [1] : vector<8x8xf32> to vector<8xf32>
    %280 = vector.shape_cast %279 : vector<8xf32> to vector<8x1xf32>
    %281 = tpu.reciprocal %280 {approx = true} : vector<8x1xf32> -> vector<8x1xf32>
    %282 = vector.broadcast %281 : vector<8x1xf32> to vector<8x8xf32>
    %283 = arith.mulf %278, %282 : vector<8x8xf32>
    %cst_124 = arith.constant dense<0.000000e+00> : vector<8x8xf32>
    %284 = tpu.matmul %283, %268, %cst_124 {dimension_numbers = #tpu.dot_dimension_numbers<[1], [0], [0], [1], [0, 0, 1, 1], [], []>} : vector<8x8xf32>, vector<8x8xf32>, vector<8x8xf32> -> vector<8x8xf32>
    %285 = vector.extract_strided_slice %237 {offsets = [8, 0], sizes = [8, 32], strides = [1, 1]} : vector<32x32xf32> to vector<8x32xf32>
    %cst_125 = arith.constant dense<0.000000e+00> : vector<8x32xf32>
    %286 = tpu.matmul %284, %285, %cst_125 {dimension_numbers = #tpu.dot_dimension_numbers<[1], [0], [0], [1], [0, 0, 1, 1], [], []>} : vector<8x8xf32>, vector<8x32xf32>, vector<8x32xf32> -> vector<8x32xf32>
    %287 = arith.addf %265, %286 : vector<8x32xf32>
    %288 = vector.extract_strided_slice %242 {offsets = [0, 16], sizes = [8, 8], strides = [1, 1]} : vector<8x96xf32> to vector<8x8xf32>
    %289 = vector.extract_strided_slice %242 {offsets = [0, 48], sizes = [8, 8], strides = [1, 1]} : vector<8x96xf32> to vector<8x8xf32>
    %290 = vector.extract_strided_slice %242 {offsets = [0, 80], sizes = [8, 8], strides = [1, 1]} : vector<8x96xf32> to vector<8x8xf32>
    %cst_126 = arith.constant dense<0.000000e+00> : vector<8x8xf32>
    %291 = tpu.matmul %288, %289, %cst_126 {dimension_numbers = #tpu.dot_dimension_numbers<[1], [1], [0], [0], [0, 0, 1, 0], [], []>} : vector<8x8xf32>, vector<8x8xf32>, vector<8x8xf32> -> vector<8x8xf32>
    %cst_127 = arith.constant 0.353553385 : f32
    %292 = vector.broadcast %cst_127 : f32 to vector<8x8xf32>
    %293 = arith.mulf %291, %292 : vector<8x8xf32>
    %294 = vector.broadcast %50 : vector<1x8xf32> to vector<8x8xf32>
    %295 = arith.addf %293, %294 : vector<8x8xf32>
    %cst_128 = arith.constant dense<0xFF800000> : vector<8xf32>
    %296 = vector.multi_reduction <maximumf>, %295, %cst_128 [1] : vector<8x8xf32> to vector<8xf32>
    %297 = vector.shape_cast %296 : vector<8xf32> to vector<8x1xf32>
    %298 = vector.broadcast %297 : vector<8x1xf32> to vector<8x8xf32>
    %299 = arith.subf %295, %298 : vector<8x8xf32>
    %300 = math.exp %299 : vector<8x8xf32>
    %cst_129 = arith.constant dense<0.000000e+00> : vector<8xf32>
    %301 = vector.multi_reduction <add>, %300, %cst_129 [1] : vector<8x8xf32> to vector<8xf32>
    %302 = vector.shape_cast %301 : vector<8xf32> to vector<8x1xf32>
    %303 = tpu.reciprocal %302 {approx = true} : vector<8x1xf32> -> vector<8x1xf32>
    %304 = vector.broadcast %303 : vector<8x1xf32> to vector<8x8xf32>
    %305 = arith.mulf %300, %304 : vector<8x8xf32>
    %cst_130 = arith.constant dense<0.000000e+00> : vector<8x8xf32>
    %306 = tpu.matmul %305, %290, %cst_130 {dimension_numbers = #tpu.dot_dimension_numbers<[1], [0], [0], [1], [0, 0, 1, 1], [], []>} : vector<8x8xf32>, vector<8x8xf32>, vector<8x8xf32> -> vector<8x8xf32>
    %307 = vector.extract_strided_slice %237 {offsets = [16, 0], sizes = [8, 32], strides = [1, 1]} : vector<32x32xf32> to vector<8x32xf32>
    %cst_131 = arith.constant dense<0.000000e+00> : vector<8x32xf32>
    %308 = tpu.matmul %306, %307, %cst_131 {dimension_numbers = #tpu.dot_dimension_numbers<[1], [0], [0], [1], [0, 0, 1, 1], [], []>} : vector<8x8xf32>, vector<8x32xf32>, vector<8x32xf32> -> vector<8x32xf32>
    %309 = arith.addf %287, %308 : vector<8x32xf32>
    %310 = vector.extract_strided_slice %242 {offsets = [0, 24], sizes = [8, 8], strides = [1, 1]} : vector<8x96xf32> to vector<8x8xf32>
    %311 = vector.extract_strided_slice %242 {offsets = [0, 56], sizes = [8, 8], strides = [1, 1]} : vector<8x96xf32> to vector<8x8xf32>
    %312 = vector.extract_strided_slice %242 {offsets = [0, 88], sizes = [8, 8], strides = [1, 1]} : vector<8x96xf32> to vector<8x8xf32>
    %cst_132 = arith.constant dense<0.000000e+00> : vector<8x8xf32>
    %313 = tpu.matmul %310, %311, %cst_132 {dimension_numbers = #tpu.dot_dimension_numbers<[1], [1], [0], [0], [0, 0, 1, 0], [], []>} : vector<8x8xf32>, vector<8x8xf32>, vector<8x8xf32> -> vector<8x8xf32>
    %cst_133 = arith.constant 0.353553385 : f32
    %314 = vector.broadcast %cst_133 : f32 to vector<8x8xf32>
    %315 = arith.mulf %313, %314 : vector<8x8xf32>
    %316 = vector.broadcast %50 : vector<1x8xf32> to vector<8x8xf32>
    %317 = arith.addf %315, %316 : vector<8x8xf32>
    %cst_134 = arith.constant dense<0xFF800000> : vector<8xf32>
    %318 = vector.multi_reduction <maximumf>, %317, %cst_134 [1] : vector<8x8xf32> to vector<8xf32>
    %319 = vector.shape_cast %318 : vector<8xf32> to vector<8x1xf32>
    %320 = vector.broadcast %319 : vector<8x1xf32> to vector<8x8xf32>
    %321 = arith.subf %317, %320 : vector<8x8xf32>
    %322 = math.exp %321 : vector<8x8xf32>
    %cst_135 = arith.constant dense<0.000000e+00> : vector<8xf32>
    %323 = vector.multi_reduction <add>, %322, %cst_135 [1] : vector<8x8xf32> to vector<8xf32>
    %324 = vector.shape_cast %323 : vector<8xf32> to vector<8x1xf32>
    %325 = tpu.reciprocal %324 {approx = true} : vector<8x1xf32> -> vector<8x1xf32>
    %326 = vector.broadcast %325 : vector<8x1xf32> to vector<8x8xf32>
    %327 = arith.mulf %322, %326 : vector<8x8xf32>
    %cst_136 = arith.constant dense<0.000000e+00> : vector<8x8xf32>
    %328 = tpu.matmul %327, %312, %cst_136 {dimension_numbers = #tpu.dot_dimension_numbers<[1], [0], [0], [1], [0, 0, 1, 1], [], []>} : vector<8x8xf32>, vector<8x8xf32>, vector<8x8xf32> -> vector<8x8xf32>
    %329 = vector.extract_strided_slice %237 {offsets = [24, 0], sizes = [8, 32], strides = [1, 1]} : vector<32x32xf32> to vector<8x32xf32>
    %cst_137 = arith.constant dense<0.000000e+00> : vector<8x32xf32>
    %330 = tpu.matmul %328, %329, %cst_137 {dimension_numbers = #tpu.dot_dimension_numbers<[1], [0], [0], [1], [0, 0, 1, 1], [], []>} : vector<8x8xf32>, vector<8x32xf32>, vector<8x32xf32> -> vector<8x32xf32>
    %331 = arith.addf %309, %330 : vector<8x32xf32>
    %c1_138 = arith.constant 1 : index
    %c0_139 = arith.constant 0 : index
    %c0_140 = arith.constant 0 : index
    %332 = vector.load %arg12[%c1_138, %c0_139, %c0_140] : memref<2x1x32xf32, #tpu.memory_space<vmem>>, vector<1x1x32xf32>
    %333 = vector.shape_cast %332 : vector<1x1x32xf32> to vector<1x32xf32>
    %334 = vector.broadcast %333 : vector<1x32xf32> to vector<8x32xf32>
    %335 = arith.addf %331, %334 : vector<8x32xf32>
    %336 = arith.addf %335, %233 : vector<8x32xf32>
    %c1_141 = arith.constant 1 : index
    %c0_142 = arith.constant 0 : index
    %c0_143 = arith.constant 0 : index
    %337 = vector.load %arg13[%c1_141, %c0_142, %c0_143] : memref<2x1x32xf32, #tpu.memory_space<vmem>>, vector<1x1x32xf32>
    %338 = vector.shape_cast %337 : vector<1x1x32xf32> to vector<1x32xf32>
    %c1_144 = arith.constant 1 : index
    %c0_145 = arith.constant 0 : index
    %c0_146 = arith.constant 0 : index
    %339 = vector.load %arg14[%c1_144, %c0_145, %c0_146] : memref<2x1x32xf32, #tpu.memory_space<vmem>>, vector<1x1x32xf32>
    %340 = vector.shape_cast %339 : vector<1x1x32xf32> to vector<1x32xf32>
    %cst_147 = arith.constant dense<0.000000e+00> : vector<8xf32>
    %341 = vector.multi_reduction <add>, %336, %cst_147 [1] : vector<8x32xf32> to vector<8xf32>
    %342 = vector.shape_cast %341 : vector<8xf32> to vector<8x1xf32>
    %cst_148 = arith.constant 3.200000e+01 : f32
    %343 = vector.broadcast %cst_148 : f32 to vector<8x1xf32>
    %344 = arith.divf %342, %343 : vector<8x1xf32>
    %345 = vector.broadcast %344 : vector<8x1xf32> to vector<8x32xf32>
    %346 = arith.subf %336, %345 : vector<8x32xf32>
    %347 = arith.mulf %346, %346 : vector<8x32xf32>
    %cst_149 = arith.constant dense<0.000000e+00> : vector<8xf32>
    %348 = vector.multi_reduction <add>, %347, %cst_149 [1] : vector<8x32xf32> to vector<8xf32>
    %349 = vector.shape_cast %348 : vector<8xf32> to vector<8x1xf32>
    %cst_150 = arith.constant 3.200000e+01 : f32
    %350 = vector.broadcast %cst_150 : f32 to vector<8x1xf32>
    %351 = arith.divf %349, %350 : vector<8x1xf32>
    %352 = vector.broadcast %344 : vector<8x1xf32> to vector<8x32xf32>
    %353 = arith.subf %336, %352 : vector<8x32xf32>
    %cst_151 = arith.constant 9.99999996E-13 : f32
    %354 = vector.broadcast %cst_151 : f32 to vector<8x1xf32>
    %355 = arith.addf %351, %354 : vector<8x1xf32>
    %356 = math.rsqrt %355 : vector<8x1xf32>
    %357 = vector.broadcast %356 : vector<8x1xf32> to vector<8x32xf32>
    %358 = arith.mulf %353, %357 : vector<8x32xf32>
    %359 = vector.broadcast %338 : vector<1x32xf32> to vector<8x32xf32>
    %360 = arith.mulf %358, %359 : vector<8x32xf32>
    %361 = vector.broadcast %340 : vector<1x32xf32> to vector<8x32xf32>
    %362 = arith.addf %360, %361 : vector<8x32xf32>
    %c1_152 = arith.constant 1 : index
    %c0_153 = arith.constant 0 : index
    %c0_154 = arith.constant 0 : index
    %363 = vector.load %arg15[%c1_152, %c0_153, %c0_154] : memref<2x32x64xf32, #tpu.memory_space<vmem>>, vector<1x32x64xf32>
    %364 = vector.shape_cast %363 : vector<1x32x64xf32> to vector<32x64xf32>
    %cst_155 = arith.constant dense<0.000000e+00> : vector<8x64xf32>
    %365 = tpu.matmul %362, %364, %cst_155 {dimension_numbers = #tpu.dot_dimension_numbers<[1], [0], [0], [1], [0, 0, 1, 1], [], []>} : vector<8x32xf32>, vector<32x64xf32>, vector<8x64xf32> -> vector<8x64xf32>
    %c1_156 = arith.constant 1 : index
    %c0_157 = arith.constant 0 : index
    %c0_158 = arith.constant 0 : index
    %366 = vector.load %arg16[%c1_156, %c0_157, %c0_158] : memref<2x1x64xf32, #tpu.memory_space<vmem>>, vector<1x1x64xf32>
    %367 = vector.shape_cast %366 : vector<1x1x64xf32> to vector<1x64xf32>
    %368 = vector.broadcast %367 : vector<1x64xf32> to vector<8x64xf32>
    %369 = arith.addf %365, %368 : vector<8x64xf32>
    %cst_159 = arith.constant 5.000000e-01 : f32
    %370 = vector.broadcast %cst_159 : f32 to vector<8x64xf32>
    %371 = arith.mulf %370, %369 : vector<8x64xf32>
    %cst_160 = arith.constant 4.471500e-02 : f32
    %372 = vector.broadcast %cst_160 : f32 to vector<8x64xf32>
    %373 = arith.mulf %372, %369 : vector<8x64xf32>
    %374 = arith.mulf %373, %369 : vector<8x64xf32>
    %375 = arith.mulf %374, %369 : vector<8x64xf32>
    %376 = arith.addf %369, %375 : vector<8x64xf32>
    %cst_161 = arith.constant 0.797884583 : f32
    %377 = vector.broadcast %cst_161 : f32 to vector<8x64xf32>
    %378 = arith.mulf %377, %376 : vector<8x64xf32>
    %379 = math.tanh %378 : vector<8x64xf32>
    %cst_162 = arith.constant 1.000000e+00 : f32
    %380 = vector.broadcast %cst_162 : f32 to vector<8x64xf32>
    %381 = arith.addf %380, %379 : vector<8x64xf32>
    %382 = arith.mulf %371, %381 : vector<8x64xf32>
    %c1_163 = arith.constant 1 : index
    %c0_164 = arith.constant 0 : index
    %c0_165 = arith.constant 0 : index
    %383 = vector.load %arg17[%c1_163, %c0_164, %c0_165] : memref<2x64x32xf32, #tpu.memory_space<vmem>>, vector<1x64x32xf32>
    %384 = vector.shape_cast %383 : vector<1x64x32xf32> to vector<64x32xf32>
    %cst_166 = arith.constant dense<0.000000e+00> : vector<8x32xf32>
    %385 = tpu.matmul %382, %384, %cst_166 {dimension_numbers = #tpu.dot_dimension_numbers<[1], [0], [0], [1], [0, 0, 1, 1], [], []>} : vector<8x64xf32>, vector<64x32xf32>, vector<8x32xf32> -> vector<8x32xf32>
    %c1_167 = arith.constant 1 : index
    %c0_168 = arith.constant 0 : index
    %c0_169 = arith.constant 0 : index
    %386 = vector.load %arg18[%c1_167, %c0_168, %c0_169] : memref<2x1x32xf32, #tpu.memory_space<vmem>>, vector<1x1x32xf32>
    %387 = vector.shape_cast %386 : vector<1x1x32xf32> to vector<1x32xf32>
    %388 = vector.broadcast %387 : vector<1x32xf32> to vector<8x32xf32>
    %389 = arith.addf %385, %388 : vector<8x32xf32>
    %390 = arith.addf %389, %362 : vector<8x32xf32>
    %c1_170 = arith.constant 1 : index
    %c0_171 = arith.constant 0 : index
    %c0_172 = arith.constant 0 : index
    %391 = vector.load %arg19[%c1_170, %c0_171, %c0_172] : memref<2x1x32xf32, #tpu.memory_space<vmem>>, vector<1x1x32xf32>
    %392 = vector.shape_cast %391 : vector<1x1x32xf32> to vector<1x32xf32>
    %c1_173 = arith.constant 1 : index
    %c0_174 = arith.constant 0 : index
    %c0_175 = arith.constant 0 : index
    %393 = vector.load %arg20[%c1_173, %c0_174, %c0_175] : memref<2x1x32xf32, #tpu.memory_space<vmem>>, vector<1x1x32xf32>
    %394 = vector.shape_cast %393 : vector<1x1x32xf32> to vector<1x32xf32>
    %cst_176 = arith.constant dense<0.000000e+00> : vector<8xf32>
    %395 = vector.multi_reduction <add>, %390, %cst_176 [1] : vector<8x32xf32> to vector<8xf32>
    %396 = vector.shape_cast %395 : vector<8xf32> to vector<8x1xf32>
    %cst_177 = arith.constant 3.200000e+01 : f32
    %397 = vector.broadcast %cst_177 : f32 to vector<8x1xf32>
    %398 = arith.divf %396, %397 : vector<8x1xf32>
    %399 = vector.broadcast %398 : vector<8x1xf32> to vector<8x32xf32>
    %400 = arith.subf %390, %399 : vector<8x32xf32>
    %401 = arith.mulf %400, %400 : vector<8x32xf32>
    %cst_178 = arith.constant dense<0.000000e+00> : vector<8xf32>
    %402 = vector.multi_reduction <add>, %401, %cst_178 [1] : vector<8x32xf32> to vector<8xf32>
    %403 = vector.shape_cast %402 : vector<8xf32> to vector<8x1xf32>
    %cst_179 = arith.constant 3.200000e+01 : f32
    %404 = vector.broadcast %cst_179 : f32 to vector<8x1xf32>
    %405 = arith.divf %403, %404 : vector<8x1xf32>
    %406 = vector.broadcast %398 : vector<8x1xf32> to vector<8x32xf32>
    %407 = arith.subf %390, %406 : vector<8x32xf32>
    %cst_180 = arith.constant 9.99999996E-13 : f32
    %408 = vector.broadcast %cst_180 : f32 to vector<8x1xf32>
    %409 = arith.addf %405, %408 : vector<8x1xf32>
    %410 = math.rsqrt %409 : vector<8x1xf32>
    %411 = vector.broadcast %410 : vector<8x1xf32> to vector<8x32xf32>
    %412 = arith.mulf %407, %411 : vector<8x32xf32>
    %413 = vector.broadcast %392 : vector<1x32xf32> to vector<8x32xf32>
    %414 = arith.mulf %412, %413 : vector<8x32xf32>
    %415 = vector.broadcast %394 : vector<1x32xf32> to vector<8x32xf32>
    %416 = arith.addf %414, %415 : vector<8x32xf32>
    %417 = vector.extract_strided_slice %416 {offsets = [0, 0], sizes = [1, 32], strides = [1, 1]} : vector<8x32xf32> to vector<1x32xf32>
    %c0_181 = arith.constant 0 : index
    %c0_182 = arith.constant 0 : index
    %418 = vector.load %arg21[%c0_181, %c0_182] : memref<32x16xf32, #tpu.memory_space<vmem>>, vector<32x16xf32>
    %cst_183 = arith.constant dense<0.000000e+00> : vector<1x16xf32>
    %419 = tpu.matmul %417, %418, %cst_183 {dimension_numbers = #tpu.dot_dimension_numbers<[1], [0], [0], [1], [0, 0, 1, 1], [], []>} : vector<1x32xf32>, vector<32x16xf32>, vector<1x16xf32> -> vector<1x16xf32>
    %c0_184 = arith.constant 0 : index
    %c0_185 = arith.constant 0 : index
    %420 = vector.load %arg22[%c0_184, %c0_185] : memref<1x16xf32, #tpu.memory_space<vmem>>, vector<1x16xf32>
    %421 = arith.addf %419, %420 : vector<1x16xf32>
    %cst_186 = arith.constant 0.000000e+00 : f32
    %422 = vector.broadcast %cst_186 : f32 to vector<1x16xf32>
    %423 = arith.cmpf oge, %421, %422 : vector<1x16xf32>
    %cst_187 = arith.constant 0.00999999977 : f32
    %424 = vector.broadcast %cst_187 : f32 to vector<1x16xf32>
    %425 = arith.mulf %424, %421 : vector<1x16xf32>
    %426 = arith.select %423, %421, %425 : vector<1x16xi1>, vector<1x16xf32>
    %c0_188 = arith.constant 0 : index
    %c0_189 = arith.constant 0 : index
    %427 = vector.load %arg23[%c0_188, %c0_189] : memref<16x2xf32, #tpu.memory_space<vmem>>, vector<16x2xf32>
    %cst_190 = arith.constant dense<0.000000e+00> : vector<1x2xf32>
    %428 = tpu.matmul %426, %427, %cst_190 {dimension_numbers = #tpu.dot_dimension_numbers<[1], [0], [0], [1], [0, 0, 1, 1], [], []>} : vector<1x16xf32>, vector<16x2xf32>, vector<1x2xf32> -> vector<1x2xf32>
    %c0_191 = arith.constant 0 : index
    %c0_192 = arith.constant 0 : index
    %429 = vector.load %arg24[%c0_191, %c0_192] : memref<1x2xf32, #tpu.memory_space<vmem>>, vector<1x2xf32>
    %430 = arith.addf %428, %429 : vector<1x2xf32>
    %c0_193 = arith.constant 0 : index
    %c0_194 = arith.constant 0 : index
    %c0_195 = arith.constant 0 : index
    %431 = vector.load %arg25[%c0_193, %c0_194, %c0_195] : memref<1x1x2xf32, #tpu.memory_space<vmem>>, vector<1x1x2xf32>
    %432 = vector.shape_cast %431 : vector<1x1x2xf32> to vector<1x2xf32>
    %433 = vector.shape_cast %430 : vector<1x2xf32> to vector<1x1x2xf32>
    tpu.vector_store %arg25[%c0_193, %c0_194, %c0_195], %433 {strides = array<i32>} : memref<1x1x2xf32, #tpu.memory_space<vmem>>, vector<1x1x2xf32>,
    return
  }
  func.func @transform_0(%arg0: i32) -> (i32, i32, i32) {
    %c0_i32 = arith.constant 0 : i32
    %c0_i32_0 = arith.constant 0 : i32
    %c0_i32_1 = arith.constant 0 : i32
    return %arg0, %c0_i32, %c0_i32_0 : i32, i32, i32
  }
  func.func @transform_1(%arg0: i32) -> (i32, i32, i32) {
    %c0_i32 = arith.constant 0 : i32
    %c0_i32_0 = arith.constant 0 : i32
    %c0_i32_1 = arith.constant 0 : i32
    return %arg0, %c0_i32, %c0_i32_0 : i32, i32, i32
  }
  func.func @transform_2(%arg0: i32) -> (i32, i32, i32) {
    %c0_i32 = arith.constant 0 : i32
    %c0_i32_0 = arith.constant 0 : i32
    %c0_i32_1 = arith.constant 0 : i32
    return %arg0, %c0_i32, %c0_i32_0 : i32, i32, i32
  }
  func.func @transform_3(%arg0: i32) -> (i32, i32) {
    %c0_i32 = arith.constant 0 : i32
    %c0_i32_0 = arith.constant 0 : i32
    %c0_i32_1 = arith.constant 0 : i32
    return %c0_i32, %c0_i32_0 : i32, i32
  }
  func.func @transform_4(%arg0: i32) -> (i32, i32) {
    %c0_i32 = arith.constant 0 : i32
    %c0_i32_0 = arith.constant 0 : i32
    %c0_i32_1 = arith.constant 0 : i32
    return %c0_i32, %c0_i32_0 : i32, i32
  }
  func.func @transform_5(%arg0: i32) -> (i32, i32) {
    %c0_i32 = arith.constant 0 : i32
    %c0_i32_0 = arith.constant 0 : i32
    %c0_i32_1 = arith.constant 0 : i32
    return %c0_i32, %c0_i32_0 : i32, i32
  }
  func.func @transform_6(%arg0: i32) -> (i32, i32) {
    %c0_i32 = arith.constant 0 : i32
    %c0_i32_0 = arith.constant 0 : i32
    %c0_i32_1 = arith.constant 0 : i32
    return %c0_i32, %c0_i32_0 : i32, i32
  }
  func.func @transform_7(%arg0: i32) -> (i32, i32) {
    %c0_i32 = arith.constant 0 : i32
    %c0_i32_0 = arith.constant 0 : i32
    %c0_i32_1 = arith.constant 0 : i32
    return %c0_i32, %c0_i32_0 : i32, i32
  }
  func.func @transform_8(%arg0: i32) -> (i32, i32, i32) {
    %c0_i32 = arith.constant 0 : i32
    %c0_i32_0 = arith.constant 0 : i32
    %c0_i32_1 = arith.constant 0 : i32
    %c0_i32_2 = arith.constant 0 : i32
    return %c0_i32, %c0_i32_0, %c0_i32_1 : i32, i32, i32
  }
  func.func @transform_9(%arg0: i32) -> (i32, i32, i32) {
    %c0_i32 = arith.constant 0 : i32
    %c0_i32_0 = arith.constant 0 : i32
    %c0_i32_1 = arith.constant 0 : i32
    %c0_i32_2 = arith.constant 0 : i32
    return %c0_i32, %c0_i32_0, %c0_i32_1 : i32, i32, i32
  }
  func.func @transform_10(%arg0: i32) -> (i32, i32, i32) {
    %c0_i32 = arith.constant 0 : i32
    %c0_i32_0 = arith.constant 0 : i32
    %c0_i32_1 = arith.constant 0 : i32
    %c0_i32_2 = arith.constant 0 : i32
    return %c0_i32, %c0_i32_0, %c0_i32_1 : i32, i32, i32
  }
  func.func @transform_11(%arg0: i32) -> (i32, i32, i32) {
    %c0_i32 = arith.constant 0 : i32
    %c0_i32_0 = arith.constant 0 : i32
    %c0_i32_1 = arith.constant 0 : i32
    %c0_i32_2 = arith.constant 0 : i32
    return %c0_i32, %c0_i32_0, %c0_i32_1 : i32, i32, i32
  }
  func.func @transform_12(%arg0: i32) -> (i32, i32, i32) {
    %c0_i32 = arith.constant 0 : i32
    %c0_i32_0 = arith.constant 0 : i32
    %c0_i32_1 = arith.constant 0 : i32
    %c0_i32_2 = arith.constant 0 : i32
    return %c0_i32, %c0_i32_0, %c0_i32_1 : i32, i32, i32
  }
  func.func @transform_13(%arg0: i32) -> (i32, i32, i32) {
    %c0_i32 = arith.constant 0 : i32
    %c0_i32_0 = arith.constant 0 : i32
    %c0_i32_1 = arith.constant 0 : i32
    %c0_i32_2 = arith.constant 0 : i32
    return %c0_i32, %c0_i32_0, %c0_i32_1 : i32, i32, i32
  }
  func.func @transform_14(%arg0: i32) -> (i32, i32, i32) {
    %c0_i32 = arith.constant 0 : i32
    %c0_i32_0 = arith.constant 0 : i32
    %c0_i32_1 = arith.constant 0 : i32
    %c0_i32_2 = arith.constant 0 : i32
    return %c0_i32, %c0_i32_0, %c0_i32_1 : i32, i32, i32
  }
  func.func @transform_15(%arg0: i32) -> (i32, i32, i32) {
    %c0_i32 = arith.constant 0 : i32
    %c0_i32_0 = arith.constant 0 : i32
    %c0_i32_1 = arith.constant 0 : i32
    %c0_i32_2 = arith.constant 0 : i32
    return %c0_i32, %c0_i32_0, %c0_i32_1 : i32, i32, i32
  }
  func.func @transform_16(%arg0: i32) -> (i32, i32, i32) {
    %c0_i32 = arith.constant 0 : i32
    %c0_i32_0 = arith.constant 0 : i32
    %c0_i32_1 = arith.constant 0 : i32
    %c0_i32_2 = arith.constant 0 : i32
    return %c0_i32, %c0_i32_0, %c0_i32_1 : i32, i32, i32
  }
  func.func @transform_17(%arg0: i32) -> (i32, i32, i32) {
    %c0_i32 = arith.constant 0 : i32
    %c0_i32_0 = arith.constant 0 : i32
    %c0_i32_1 = arith.constant 0 : i32
    %c0_i32_2 = arith.constant 0 : i32
    return %c0_i32, %c0_i32_0, %c0_i32_1 : i32, i32, i32
  }
  func.func @transform_18(%arg0: i32) -> (i32, i32, i32) {
    %c0_i32 = arith.constant 0 : i32
    %c0_i32_0 = arith.constant 0 : i32
    %c0_i32_1 = arith.constant 0 : i32
    %c0_i32_2 = arith.constant 0 : i32
    return %c0_i32, %c0_i32_0, %c0_i32_1 : i32, i32, i32
  }
  func.func @transform_19(%arg0: i32) -> (i32, i32, i32) {
    %c0_i32 = arith.constant 0 : i32
    %c0_i32_0 = arith.constant 0 : i32
    %c0_i32_1 = arith.constant 0 : i32
    %c0_i32_2 = arith.constant 0 : i32
    return %c0_i32, %c0_i32_0, %c0_i32_1 : i32, i32, i32
  }
  func.func @transform_20(%arg0: i32) -> (i32, i32) {
    %c0_i32 = arith.constant 0 : i32
    %c0_i32_0 = arith.constant 0 : i32
    %c0_i32_1 = arith.constant 0 : i32
    return %c0_i32, %c0_i32_0 : i32, i32
  }
  func.func @transform_21(%arg0: i32) -> (i32, i32) {
    %c0_i32 = arith.constant 0 : i32
    %c0_i32_0 = arith.constant 0 : i32
    %c0_i32_1 = arith.constant 0 : i32
    return %c0_i32, %c0_i32_0 : i32, i32
  }
  func.func @transform_22(%arg0: i32) -> (i32, i32) {
    %c0_i32 = arith.constant 0 : i32
    %c0_i32_0 = arith.constant 0 : i32
    %c0_i32_1 = arith.constant 0 : i32
    return %c0_i32, %c0_i32_0 : i32, i32
  }
  func.func @transform_23(%arg0: i32) -> (i32, i32) {
    %c0_i32 = arith.constant 0 : i32
    %c0_i32_0 = arith.constant 0 : i32
    %c0_i32_1 = arith.constant 0 : i32
    return %c0_i32, %c0_i32_0 : i32, i32
  }
  func.func @transform_24(%arg0: i32) -> (i32, i32, i32) {
    %c0_i32 = arith.constant 0 : i32
    %c0_i32_0 = arith.constant 0 : i32
    %c0_i32_1 = arith.constant 0 : i32
    return %arg0, %c0_i32, %c0_i32_0 : i32, i32, i32
  }
}

</mosaic_0001>

<bundles_post_ra>
// kernel: bert_gender_classifier_forward.1
= control target key start
LH: loop header
LB: loop body
LE: loop exit
PB: predicated region body
PF: predicated region fallthrough
CT: control target
= control target key end

     0   :  { %s5244_s0 = inlined_call_operand.vmem [shape: s32[2,8,1], index: 0, kind: input, shape index: {}]   ;;  %s5245_s1 = inlined_call_operand.vmem [shape: s32[2,8,1], index: 1, kind: input, shape index: {}]   ;;  %s5246_s2 = inlined_call_operand.vmem [shape: f32[2,1,8], index: 2, kind: input, shape index: {}]   ;;  %s5247_s3 = inlined_call_operand.vmem [shape: f32[50,32], index: 3, kind: input, shape index: {}]   ;;  %s5248_s4 = inlined_call_operand.vmem [shape: f32[8,32], index: 4, kind: input, shape index: {}]   ;;  %s5249_s5 = inlined_call_operand.vmem [shape: f32[2,32], index: 5, kind: input, shape index: {}]   ;;  %s5250_s6 = inlined_call_operand.vmem [shape: f32[1,32], index: 6, kind: input, shape index: {}]   ;;  %s5251_s7 = inlined_call_operand.vmem [shape: f32[1,32], index: 7, kind: input, shape index: {}]   ;;  %s5252_s8 = inlined_call_operand.vmem [shape: f32[2,32,96], index: 8, kind: input, shape index: {}]   ;;  %s5253_s9 = inlined_call_operand.vmem [shape: f32[2,1,96], index: 9, kind: input, shape index: {}]   ;;  %s5254_s10 = inlined_call_operand.vmem [shape: f32[2,32,32], index: 10, kind: input, shape index: {}]   ;;  %s5255_s11 = inlined_call_operand.vmem [shape: f32[2,1,32], index: 11, kind: input, shape index: {}]   ;;  %s5256_s12 = inlined_call_operand.vmem [shape: f32[2,1,32], index: 12, kind: input, shape index: {}]   ;;  %s5257_s13 = inlined_call_operand.vmem [shape: f32[2,1,32], index: 13, kind: input, shape index: {}]   ;;  %s5258_s14 = inlined_call_operand.vmem [shape: f32[2,32,64], index: 14, kind: input, shape index: {}]   ;;  %s5259_s15 = inlined_call_operand.vmem [shape: f32[2,1,64], index: 15, kind: input, shape index: {}]   ;;  %s5260_s16 = inlined_call_operand.vmem [shape: f32[2,64,32], index: 16, kind: input, shape index: {}]   ;;  %s5261_s17 = inlined_call_operand.vmem [shape: f32[2,1,32], index: 17, kind: input, shape index: {}]   ;;  %s5262_s18 = inlined_call_operand.vmem [shape: f32[2,1,32], index: 18, kind: input, shape index: {}]   ;;  %s5263_s19 = inlined_call_operand.vmem [shape: f32[2,1,32], index: 19, kind: input, shape index: {}]   ;;  %s5264_s20 = inlined_call_operand.vmem [shape: f32[32,16], index: 20, kind: input, shape index: {}]   ;;  %s5265_s21 = inlined_call_operand.vmem [shape: f32[1,16], index: 21, kind: input, shape index: {}]   ;;  %s5266_s22 = inlined_call_operand.vmem [shape: f32[16,2], index: 22, kind: input, shape index: {}]   ;;  %s5267_s23 = inlined_call_operand.vmem [shape: f32[1,2], index: 23, kind: input, shape index: {}]   ;;  %s5268_s24 = inlined_call_operand.hbm [shape: f32[2,1,2], index: 24, kind: output, shape index: {}]  }
   0x1   :  { %5286 = sst [smem:[#allocation13_spill]] %s5244_s0 }
   0x2   :  { %5287 = sst [smem:[#allocation14_spill]] %s5245_s1 }
   0x3   :  { %5288 = sst [smem:[#allocation15_spill]] %s5246_s2 }
   0x4   :  { %5289 = sst [smem:[#allocation16_spill]] %s5247_s3 }
   0x5   :  { %5290 = sst [smem:[#allocation17_spill]] %s5248_s4 }
   0x6   :  { %5291 = sst [smem:[#allocation18_spill]] %s5249_s5 }
   0x7   :  { %5292 = sst [smem:[#allocation19_spill]] %s5250_s6 }
   0x8   :  { %5293 = sst [smem:[#allocation20_spill]] %s5251_s7 }
   0x9   :  { %5294 = sst [smem:[#allocation21_spill]] %s5252_s8 }
   0xa   :  { %5295 = sst [smem:[#allocation22_spill]] %s5265_s21 }
   0xb   :  { %5296 = sst [smem:[#allocation23_spill]] %s5266_s22 }
   0xc   :  { %5297 = sst [smem:[#allocation24_spill]] %s5267_s23 }
   0xd   :  { %5298 = sst [smem:[#allocation25_spill]] %s5268_s24 }
   0xe   :  { %29 = vsyncpa [#allocation3], 0 }
   0xf   :  { %31 = vsyncpa [#allocation3 + $0x1], 0  ;;  %s4662_s5 = smov 0   ;;  %s4664_s26 = smov 0  }
  0x10   :  { %s4666_s27 = smov 0   ;;  %s4668_s28 = smov 0  }
  0x11 LB: > { %5299 = sst [smem:[#allocation5_spill]] %s4507_s5  ;;  %s4683_s6 = sadd.s32 4294967295, %s4519_s28   ;;  %s4519_s28 = sphi %s4668_s28, %s5331_s28   ;;  %s4515_s27 = sphi %s4666_s27, %s5333_s27   ;;  %s4511_s26 = sphi %s4664_s26, %s5335_s26   ;;  %s4507_s5 = sphi %s4662_s5, %s5334_s5  }
  0x12   : > { %5300 = sst [smem:[#allocation6_spill]] %s4515_s27  ;;  %s3843_s2 = sadd.s32 4294967294, %s4519_s28  }
  0x13   : > { %5301 = sst [smem:[#allocation7_spill]] %s4519_s28  ;;  %s4687_s29 = sadd.s32 1, %s4519_s28  }
  0x14   : > { %5302 = sst [smem:[#allocation8_spill]] %s4683_s6  ;;  %s563_s0 = sadd.s32 1, %s4515_s27 }
  0x15   : > { %5303 = sst [smem:[#allocation9_spill]] %s4687_s29  ;;  %s560_s7 = ssub.s32 %s4519_s28, %s4687_s29 }
  0x16   : > { %p573_p0 = scmp.ne.s32.totalorder %s4515_s27, %s4511_s26  ;;  %p561_p1 = scmp.eq.s32.totalorder %s560_s7, 0 }
  0x17   : > { %p574_p2 = scmp.eq.s32.totalorder %s4683_s6, 1  ;;  %p579_p3 = scmp.ne.s32.totalorder %s4511_s26, %s4507_s5 }
  0x18   : > { %p580_p4 = scmp.eq.s32.totalorder %s3843_s2, 1  ;;  %p3846_p7 = scmp.ge.s32.totalorder %s4519_s28, 1 }
  0x19   : > { %s4698_s30 = scalar_select %p561_p1, %s4515_s27, %s563_s0  }
  0x1a   : > { %p4700_p5 = por %p574_p2, %p573_p0  ;;  %p4704_p6 = por %p580_p4, %p579_p3 }
  0x1b   : > { %5304 = sst [smem:[#allocation10_spill]] %s4698_s30  ;;  %p681_p8 = scmp.lt.s32.totalorder %s4519_s28, 3 }
  0x1c   : > { %s5305_s3 = scalar_select %p4700_p5, 1, 0 }
  0x1d   : > { %s5307_s25 = scalar_select %p4704_p6, 1, 0 }
  0x1e   : > { %5306 = sst [smem:[#allocation11_spill]] %s5305_s3  ;;  %p682_p9 = pnand %p3846_p7, %p681_p8 }
  0x1f   : > { %5308 = sst [smem:[#allocation12_spill]] %s5307_s25  ;;  %p752_p10 = scmp.lt.s32.totalorder (!%p682_p9), %s4683_s6, 1  ;;  %v765_v3 = vlaneseq (!%p682_p9)  ;;  %v4521_v4 = vmov (!%p682_p9), 0   ;;  %v4522_v5 = vmov (!%p682_p9), 0.0|0.0   ;;  %v4523_v9 = vmov (!%p682_p9), 0.0  }
  0x20   : > { %685 = sbr.rel (%p682_p9) target bundleno = 8466 (0x2112), region = 116  ;;  %s5309_s1 = sld [smem:[#allocation16_spill]] (!%p682_p9)  ;;  %4410 = vset.pattern.permute.xlu0 (!%p682_p9), %v4521_v4  ;;  %4290 = vmatprep.subr.bf16.mxu1 (!%p682_p9), %v4522_v5  ;;  %vm4524_vm0 = vmmov (!%p682_p9), 0   ;;  %vm791_vm1 = vcmask (!%p682_p9), 1041408   ;;  %vm865_vm2 = vcmask (!%p682_p9), 408576   ;;  %vm787_vm4 = vcmask (!%p682_p9), 15360  }
  0x21   : > { %v1147_v8 = vshrl.u32 (!%p682_p9), %v765_v3, 7  ;;  %4048 = vmatprep.subr.mxu0 (!%p682_p9), %v4523_v9  ;;  %s5310_s0 = sld [smem:[#allocation15_spill]] (!%p682_p9)  ;;  %s5311_s23 = sld [smem:[#allocation13_spill]] (!%p682_p9)  ;;  %4067 = vmatprep.mubr.msk.f32.mxu1 (!%p682_p9), %vm4524_vm0, %v4523_v9  ;;  %v766_v23 = vand.u32 (!%p682_p9), 127, %v765_v3  ;;  %vm946_vm6 = vcmask (!%p682_p9), 261120   ;;  %vm1069_vm7 = vcmask (!%p682_p9), 64512  }
  0x22   : > { %s5312_s22 = sld [smem:[#allocation14_spill]] (!%p682_p9)  ;;  %4050 = vmatprep.mubr.msk.f32.mxu0 (!%p682_p9), %vm4524_vm0, %v4523_v9  ;;  %s5317_s28 = sld [smem:[#allocation20_spill]] (!%p682_p9)  ;;  %v3857_v56 = vld [vmem:[%s5253_s9] ss:$0 sm:$0xff] (!%p682_p9)  ;;  %vm2180_vm8 = vcmask (!%p682_p9), 523264   ;;  %vm3678_vm10 = vcmask (!%p682_p9), 130048  }
  0x23   : > { %v1148_v16 = vsub.s32 (!%p682_p9), 0, %v1147_v8  ;;  %s4525_s25 = smov (!%p682_p9), 88   ;;  %s4527_s2 = smov (!%p682_p9), 120   ;;  %vm3752_vm11 = vcmask (!%p682_p9), 8192  }
  0x24   : > { %s4530_s27 = smov (!%p682_p9), 64   ;;  %s4531_s29 = smov (!%p682_p9), 80  }
  0x25   : > { %s5283_s24 = smov (!%p682_p9), 48   ;;  %s5284_s5 = smov (!%p682_p9), 104  }
  0x26   : > { %v779_v0 = vld [vmem:[%s5309_s1] sm:$0xff] (!%p682_p9)  ;;  %v780_v1 = vld [vmem:[%s5309_s1 + $0x8] sm:$0xff] (!%p682_p9)  ;;  %v781_v2 = vld [vmem:[%s5309_s1 + $0x10] sm:$0xff] (!%p682_p9) }
  0x27   : > { %v4291_v6 = vpack.c.bf16 %v780_v1, %v779_v0  ;;  %v782_v7 = vld [vmem:[%s5309_s1 + $0x18] sm:$0xff]  ;;  %s753_s8 = scalar_select %p752_p10, %s4683_s6, 1  ;;  %v783_v11 = vld [vmem:[%s5309_s1 + $0x20] sm:$0xff]  ;;  %v784_v12 = vld [vmem:[%s5309_s1 + $0x28] sm:$0xff] }
  0x28   : > { %v4294_v10 = vpack.c.bf16 %v782_v7, %v781_v2  ;;  %v4297_v17 = vpack.c.bf16 %v784_v12, %v783_v11  ;;  %v785_v22 = vld [vmem:[%s5309_s1 + $0x30] sm:$0x3]  ;;  %v3856_v53 = vld [vmem:[%s5317_s28] ss:$0 sm:$0xff]  ;;  %s5285_s28 = smov 72   ;;  %s5322_s6 = sld [smem:[#allocation23_spill]] }
  0x29   : > { %4292 = vmatpush3.bf16.msra.mxu1 %v4291_v6  ;;  %s3847_s30 = sshll.u32 %s753_s8, 3  ;;  %s762_s7 = scalar_lea.vmem %s5310_s0, %s753_s8 }
  0x2a   : > { %4293 = vmatprep.subr.bf16.mxu1 %v4522_v5  ;;  %s755_s3 = scalar_lea.vmem %s5311_s23, %s3847_s30  ;;  %v975_v13 = vld [vmem:[%s762_s7] sm:$0x1]  ;;  %s759_s4 = scalar_lea.vmem %s5312_s22, %s3847_s30 }
  0x2b   : > { %v763_v14 = vld [vmem:[%s755_s3] sm:$0xff]  ;;  %v976_v15 = vsub.f32 1.0, %v975_v13  ;;  %s5313_s23 = sld [smem:[#allocation18_spill]]  ;;  %s5314_s3 = sld [smem:[#allocation17_spill]] }
  0x2c   : > { %768 = vperm.xlu0 %4410, %v763_v14   ;;  %v764_v19 = vld [vmem:[%s759_s4] sm:$0xff]  ;;  %s5315_s30 = sld [smem:[#allocation21_spill]]  ;;  %s4526_s8 = smov 96  }
  0x2d   : > { %4295 = vmatpush3.bf16.msra.mxu1 %v4294_v10  ;;  %v977_v18 = vmul.f32 -10000.0, %v976_v15  ;;  %s4528_s0 = smov 56   ;;  %s4529_s7 = smov 112  }
  0x2e   : > { %4296 = vmatprep.subr.bf16.mxu1 %v4522_v5  ;;  %s5282_s4 = smov 40  }
  0x2f   : > { %v4747_v20 = vrot.slane %v977_v18, %v1148_v16 }
  0x30   : > { %774 = vperm.xlu0 %4410, %v764_v19  }
  0x31   : > { %4298 = vmatpush3.bf16.msra.mxu1 %v4297_v17  ;;  %v786_v21 = vld [vmem:[%s5313_s23] sm:$0x3]  ;;  %s5316_s23 = sld [smem:[#allocation19_spill]] }
  0x32   : > { %4065 = vmatprep.subr.mxu1 %v4523_v9  ;;  %4049 = vmatpush3.msk.msra.mxu0 %vm791_vm1, %v786_v21  ;;  %v942_v31 = vld [vmem:[%s5314_s3] sm:$0xff]  ;;  %v979_v42 = vld [vmem:[%s5315_s30 + $0x8] sm:$0xff]  ;;  %v980_v44 = vld [vmem:[%s5315_s30 + $0x10] sm:$0xff]  ;;  %s5323_s3 = sld [smem:[#allocation8_spill]] }
  0x33   : > { %4299 = vmatprep.subr.bf16.mxu0 %v4522_v5  ;;  %v978_v41 = vld [vmem:[%s5315_s30] sm:$0xff]  ;;  %v981_v45 = vld [vmem:[%s5315_s30 + $0x18] sm:$0xff] }
  0x34   : > { %v4300_v43 = vpack.c.bf16 %v979_v42, %v978_v41  ;;  %v4303_v46 = vpack.c.bf16 %v981_v45, %v980_v44 }
  0x35   : > { %4066 = vmatpush3.msk.msra.mxu1 %vm791_vm1, %v785_v22  ;;  %v983_v22 = vld [vmem:[%s5254_s10 + $0x8] sm:$0xff] }
  0x36   : > { %4091 = vmatprep.subr.mxu1 %v4523_v9 }
  0x37   : > { %v3855_v51 = vld [vmem:[%s5316_s23] ss:$0 sm:$0xff] }
  0x38   : > { %s3941_s22 = sshll.u32 %s5323_s3, 4  ;;  %s4536_s3 = smov [#allocation2]  }
  0xab   : > { %v769_v24 = vpop.permute.xlu0 %768 }
  0xac   : > { %vm770_vm3 = vcmp.eq.s32.totalorder %v769_v24, %v766_v23 }
  0xad   : > { %v3849_v25 = vsel %vm770_vm3, 1.0, %v4523_v9 }
  0xae   : > { %4068 = vmatmul.mubr.msk.f32.vlgmr.msra.gmra.mrb[0].mxu1 %vm865_vm2, %v3849_v25 }
  0xaf   : > { %v775_v26 = vpop.permute.xlu0 %774  ;;  %4093 = vmatprep.mubr.msk.f32.mxu1 %vm4524_vm0, %v4523_v9 }
  0xb0   : > { %vm776_vm5 = vcmp.eq.s32.totalorder %v775_v26, %v766_v23 }
  0xb1   : > { %v3850_v27 = vsel %vm776_vm5, 1.0, %v4523_v9 }
  0xb2   : > { %4051 = vmatmul.mubr.msk.f32.vlgmr.msra.gmra.mrb[0].mxu0 %vm787_vm4, %v3850_v27 }
  0xb3   : > { %4078 = vmatprep.mubr.msk.f32.mxu0 %vm4524_vm0, %v4523_v9  ;;  %4301 = vmatpush3.bf16.msra.mxu0 %v4300_v43 }
  0xb4   : > { %4302 = vmatprep.subr.bf16.mxu0 %v4522_v5 }
  0xb7   : > { %4304 = vmatpush3.bf16.msra.mxu0 %v4303_v46 }
  0xb8   : > { %4081 = vmatprep.subr.mxu0 %v4523_v9 }
 0x181   : > { %v938_v28 = vpop.f32.mrb[0].mxu1 }
 0x182   : > { %v4069_v29 = vpop.f32.mrb[1].mxu1 }
 0x185   : > { %v861_v30 = vpop.f32.mrb[0].mxu0 }
 0x186   : > { %v939_v32 = vadd.f32 %v938_v28, %v861_v30  ;;  %v4052_v33 = vpop.f32.mrb[1].mxu0 }
 0x188   : > { %v943_v34 = vadd.f32 %v942_v31, %v939_v32  ;;  %v982_v31 = vld [vmem:[%s5254_s10] sm:$0xff] }
 0x18a   : > { %v947_v35 = vsel %vm946_vm6, %v943_v34, 0.0 }
 0x18b   : > { %948 = vadd.xlane.f32.xlu1 %v947_v35 }
 0x218   : > { %v949_v36 = vpop.xlane.xlu1 %948 }
 0x219   : > { %v951_v37 = vmul.f32 0.03125, %v949_v36 }
 0x21b   : > { %v952_v38 = vsub.f32 %v943_v34, %v951_v37 }
 0x21d   : > { %v953_v39 = vmul.f32 %v952_v38, %v952_v38 }
 0x21f   : > { %v954_v40 = vsel %vm946_vm6, %v953_v39, 0.0 }
 0x220   : > { %955 = vadd.xlane.f32.xlu1 %v954_v40 }
 0x2ad   : > { %v956_v47 = vpop.xlane.xlu1 %955 }
 0x2ae   : > { %v957_v48 = vmul.f32 0.03125, %v956_v47 }
 0x2b0   : > { %v958_v49 = vadd.f32 1e-12, %v957_v48 }
 0x2b2   : > { %4411 = vrsqrt.f32 %v958_v49 }
 0x2bc   : > { %v4412_v50 = vpop.eup %4411 }
 0x2bd   : > { %v960_v52 = vmul.f32 %v4412_v50, %v952_v38 }
 0x2bf   : > { %v967_v54 = vmul.f32 %v3855_v51, %v960_v52 }
 0x2c1   : > { %v4789_v55 = vadd.f32 %v3856_v53, %v967_v54 }
 0x2c3   : > { %4079 = vmatmul.mubr.msk.f32.vlgmr.msra.gmra.mrb[2].mxu0 %vm946_vm6, %v4789_v55 }
 0x2c4   : > { %4083 = vmatprep.mubr.msk.f32.mxu0 %vm4524_vm0, %v4523_v9 }
 0x396   : > { %v1062_v57 = vpop.f32.mrb[2].mxu0 }
 0x397   : > { %v4798_v58 = vadd.f32 %v3857_v56, %v1062_v57  ;;  %v4080_v59 = vpop.f32.mrb[3].mxu0 }
 0x399   : > { %1241 = vrot.lane.b32.xlu1 %v4798_v58, %s4525_s25  ;;  %1067 = vrot.lane.b32.xlu0 %v4798_v58, %s4526_s8 }
 0x39d   : > { %1239 = vrot.lane.b32.xlu0 %v4798_v58, %s4527_s2 }
 0x40b   : > { %v1242_v60 = vpop.permute.xlu1 %1241  ;;  %v1068_v61 = vpop.permute.xlu0 %1067 }
 0x40c   : > { %4082 = vmatpush3.xpose.msk.msra.mxu0 %vm1069_vm7, %v1068_v61  ;;  %4092 = vmatpush3.xpose.msk.msra.mxu1 %vm1069_vm7, %v1242_v60  ;;  %v984_v61 = vld [vmem:[%s5254_s10 + $0x10] sm:$0xff] }
 0x40d   : > { %4086 = vmatprep.subr.mxu0 %v4523_v9  ;;  %4101 = vmatprep.subr.mxu1 %v4523_v9 }
 0x40f   : > { %4084 = vmatmul.mubr.msk.f32.vlgmr.msra.gmra.mrb[4].mxu0 %vm1069_vm7, %v4798_v58  ;;  %v1240_v62 = vpop.permute.xlu0 %1239 }
 0x410   : > { %4094 = vmatmul.mubr.msk.f32.vlgmr.msra.gmra.mrb[2].mxu1 %vm1069_vm7, %v1240_v62  ;;  %4088 = vmatprep.mubr.msk.f32.mxu0 %vm4524_vm0, %v4523_v9 }
 0x411   : > { %4103 = vmatprep.mubr.msk.f32.mxu1 %vm4524_vm0, %v4523_v9  ;;  %4102 = vmatpush3.msra.mxu1 %v983_v22 }
 0x412   : > { %4111 = vmatprep.subr.mxu1 %v4523_v9 }
 0x4e2   : > { %v1140_v63 = vpop.f32.mrb[4].mxu0 }
 0x4e3   : > { %v1144_v0 = vmul.f32 0.35355338, %v1140_v63  ;;  %v4085_v1 = vpop.f32.mrb[5].mxu0  ;;  %v1313_v2 = vpop.f32.mrb[2].mxu1 }
 0x4e4   : > { %v1317_v3 = vmul.f32 0.35355338, %v1313_v2  ;;  %v4095_v4 = vpop.f32.mrb[3].mxu1 }
 0x4e5   : > { %v1151_v6 = vadd.f32 %v4747_v20, %v1144_v0 }
 0x4e6   : > { %v1318_v7 = vadd.f32 %v1317_v3, %v4747_v20 }
 0x4e7   : > { %v1152_v8 = vsel %vm1069_vm7, %v1151_v6, -inf }
 0x4e8   : > { %1153 = vmax.xlane.f32.xlu0 %v1152_v8  ;;  %v1319_v10 = vsel %vm1069_vm7, %v1318_v7, -inf }
 0x4e9   : > { %1320 = vmax.xlane.f32.xlu1 %v1319_v10 }
 0x4fa   : > { %1330 = vrot.lane.b32.xlu1 %v4798_v58, %s4528_s0 }
 0x4fe   : > { %1552 = vrot.lane.b32.xlu1 %v4798_v58, %s4529_s7 }
 0x575   : > { %v1154_v11 = vpop.xlane.xlu0 %1153 }
 0x576   : > { %v1155_v12 = vsub.f32 %v1151_v6, %v1154_v11  ;;  %v1321_v13 = vpop.xlane.xlu1 %1320 }
 0x577   : > { %v1322_v14 = vsub.f32 %v1318_v7, %v1321_v13 }
 0x578   : > { %v1156_v15 = vmul.f32 1.442695, %v1155_v12  ;;  %v985_v12 = vld [vmem:[%s5254_s10 + $0x18] sm:$0xff] }
 0x579   : > { %v1323_v16 = vmul.f32 1.442695, %v1322_v14 }
 0x57a   : > { %4413 = vpow2.f32 %v1156_v15  ;;  %v1331_v28 = vpop.permute.xlu1 %1330 }
 0x57b   : > { %4415 = vpow2.f32 %v1323_v16 }
 0x57e   : > { %v1553_v37 = vpop.permute.xlu1 %1552 }
 0x584   : > { %v4414_v17 = vpop.eup %4413 }
 0x585   : > { %v1158_v18 = vsel %vm1069_vm7, %v4414_v17, 0.0  ;;  %v4416_v19 = vpop.eup %4415 }
 0x586   : > { %1159 = vadd.xlane.f32.xlu0 %v1158_v18  ;;  %v1325_v21 = vsel %vm1069_vm7, %v4416_v19, 0.0 }
 0x58a   : > { %1326 = vadd.xlane.f32.xlu0 %v1325_v21 }
 0x5a0   : > { %1163 = vrot.lane.b32.xlu0 %v4798_v58, %s4530_s27 }
 0x5a4   : > { %1554 = vrot.lane.b32.xlu0 %v4798_v58, %s4531_s29 }
 0x613   : > { %v1160_v23 = vpop.xlane.xlu0 %1159 }
 0x614   : > { %4417 = vrcp.f32 %v1160_v23  ;;  %v3875_v23 = vld [vmem:[%s5255_s11] ss:$0 sm:$0xff] }
 0x617   : > { %v1327_v24 = vpop.xlane.xlu0 %1326 }
 0x618   : > { %4419 = vrcp.f32 %v1327_v24 }
 0x61b   : > { %v1164_v25 = vpop.permute.xlu0 %1163 }
 0x61c   : > { %4087 = vmatpush3.msra.mxu0 %v1164_v25 }
 0x61d   : > { %4096 = vmatprep.subr.mxu0 %v4523_v9 }
 0x61e   : > { %v4418_v26 = vpop.eup %4417 }
 0x61f   : > { %v1162_v27 = vmul.f32 %v4418_v26, %v4414_v17  ;;  %v1555_v35 = vpop.permute.xlu0 %1554 }
 0x621   : > { %4089 = vmatmul.mubr.msk.f32.vlgmr.msra.gmra.mrb[6].mxu0 %vm1069_vm7, %v1162_v27 }
 0x622   : > { %v4420_v29 = vpop.eup %4419  ;;  %4097 = vmatpush3.msra.mxu0 %v1331_v28  ;;  %4098 = vmatprep.mubr.msk.f32.mxu0 %vm4524_vm0, %v4523_v9 }
 0x623   : > { %v1329_v30 = vmul.f32 %v4420_v29, %v4416_v19  ;;  %4106 = vmatprep.subr.mxu0 %v4523_v9 }
 0x625   : > { %4099 = vmatmul.mubr.msk.f32.vlgmr.msra.gmra.mrb[8].mxu0 %vm1069_vm7, %v1329_v30 }
 0x626   : > { %4108 = vmatprep.mubr.msk.f32.mxu0 %vm4524_vm0, %v4523_v9  ;;  %4107 = vmatpush3.msra.mxu0 %v982_v31 }
 0x627   : > { %4116 = vmatprep.subr.mxu0 %v4523_v9 }
 0x6f4   : > { %v1235_v32 = vpop.f32.mrb[6].mxu0 }
 0x6f5   : > { %v4090_v33 = vpop.f32.mrb[7].mxu0  ;;  %4109 = vmatmul.mubr.msk.f32.vlgmr.msra.gmra.mrb[10].mxu0 %vm1069_vm7, %v1235_v32 }
 0x6f6   : > { %4118 = vmatprep.mubr.msk.f32.mxu0 %vm4524_vm0, %v4523_v9 }
 0x6f8   : > { %v1402_v34 = vpop.f32.mrb[8].mxu0 }
 0x6f9   : > { %v4100_v36 = vpop.f32.mrb[9].mxu0  ;;  %4104 = vmatmul.mubr.msk.f32.vlgmr.msra.gmra.mrb[4].mxu1 %vm1069_vm7, %v1402_v34  ;;  %v2072_v34 = vld [vmem:[%s5258_s14] sm:$0xff] }
 0x6fa   : > { %4112 = vmatpush3.xpose.msk.msra.mxu1 %vm1069_vm7, %v1555_v35  ;;  %4113 = vmatprep.mubr.msk.f32.mxu1 %vm4524_vm0, %v4523_v9  ;;  %v2073_v35 = vld [vmem:[%s5258_s14 + $0x8] sm:$0xff] }
 0x6fb   : > { %4121 = vmatprep.subr.mxu1 %v4523_v9  ;;  %v4306_v36 = vpack.c.bf16 %v2073_v35, %v2072_v34  ;;  %v3882_v34 = vld [vmem:[%s5262_s18] ss:$0 sm:$0xff] }
 0x6fd   : > { %4114 = vmatmul.mubr.msk.f32.vlgmr.msra.gmra.mrb[6].mxu1 %vm1069_vm7, %v1553_v37  ;;  %v2075_v37 = vld [vmem:[%s5258_s14 + $0x18] sm:$0xff] }
 0x6fe   : > { %4123 = vmatprep.mubr.msk.f32.mxu1 %vm4524_vm0, %v4523_v9  ;;  %4122 = vmatpush3.msra.mxu1 %v984_v61 }
 0x6ff   : > { %4131 = vmatprep.subr.mxu1 %v4523_v9 }
 0x7c8   : > { %v1548_v38 = vpop.f32.mrb[10].mxu0 }
 0x7c9   : > { %v4110_v39 = vpop.f32.mrb[11].mxu0 }
 0x7cc   : > { %v1475_v40 = vpop.f32.mrb[4].mxu1 }
 0x7cd   : > { %v1549_v41 = vadd.f32 %v1548_v38, %v1475_v40  ;;  %v4105_v42 = vpop.f32.mrb[5].mxu1 }
 0x7d0   : > { %v1626_v43 = vpop.f32.mrb[6].mxu1 }
 0x7d1   : > { %v1630_v44 = vmul.f32 0.35355338, %v1626_v43  ;;  %v4115_v45 = vpop.f32.mrb[7].mxu1  ;;  %v3876_v43 = vld [vmem:[%s5256_s12] ss:$0 sm:$0xff] }
 0x7d2   : > { %v3877_v45 = vld [vmem:[%s5257_s13] ss:$0 sm:$0xff] }
 0x7d3   : > { %v1631_v46 = vadd.f32 %v1630_v44, %v4747_v20 }
 0x7d5   : > { %v1632_v47 = vsel %vm1069_vm7, %v1631_v46, -inf }
 0x7d6   : > { %1633 = vmax.xlane.f32.xlu0 %v1632_v47 }
 0x7ec   : > { %1643 = vrot.lane.b32.xlu0 %v4798_v58, %s5283_s24  ;;  %s5321_s24 = smov 40  }
 0x7f0   : > { %1793 = vrot.lane.b32.xlu0 %v4798_v58, %s5284_s5 }
 0x863   : > { %v1634_v48 = vpop.xlane.xlu0 %1633 }
 0x864   : > { %v1635_v49 = vsub.f32 %v1631_v46, %v1634_v48  ;;  %v2165_v48 = vld [vmem:[%s5260_s16] sm:$0xff] }
 0x866   : > { %v1636_v50 = vmul.f32 1.442695, %v1635_v49  ;;  %v2166_v49 = vld [vmem:[%s5260_s16 + $0x8] sm:$0xff] }
 0x867   : > { %v1644_v51 = vpop.permute.xlu0 %1643 }
 0x868   : > { %4421 = vpow2.f32 %v1636_v50  ;;  %4117 = vmatpush3.msra.mxu0 %v1644_v51  ;;  %v4312_v50 = vpack.c.bf16 %v2166_v49, %v2165_v48  ;;  %v2167_v51 = vld [vmem:[%s5260_s16 + $0x10] sm:$0xff] }
 0x869   : > { %4126 = vmatprep.subr.mxu0 %v4523_v9 }
 0x86b   : > { %v1794_v60 = vpop.permute.xlu0 %1793 }
 0x872   : > { %v4422_v52 = vpop.eup %4421 }
 0x873   : > { %v1638_v53 = vsel %vm1069_vm7, %v4422_v52, 0.0 }
 0x874   : > { %1639 = vadd.xlane.f32.xlu1 %v1638_v53 }
 0x885   : > { %1795 = vrot.lane.b32.xlu1 %v4798_v58, %s5285_s28  ;;  %s5326_s28 = sld [smem:[#allocation24_spill]] }
 0x901   : > { %v1640_v54 = vpop.xlane.xlu1 %1639 }
 0x902   : > { %4423 = vrcp.f32 %v1640_v54  ;;  %v2169_v54 = vld [vmem:[%s5260_s16 + $0x20] sm:$0xff] }
 0x905   : > { %v1796_v59 = vpop.permute.xlu1 %1795 }
 0x90c   : > { %v4424_v56 = vpop.eup %4423 }
 0x90d   : > { %v1642_v57 = vmul.f32 %v4424_v56, %v4422_v52  ;;  %v2168_v52 = vld [vmem:[%s5260_s16 + $0x18] sm:$0xff]  ;;  %v2170_v56 = vld [vmem:[%s5260_s16 + $0x28] sm:$0xff] }
 0x90e   : > { %v4315_v53 = vpack.c.bf16 %v2168_v52, %v2167_v51 }
 0x90f   : > { %4119 = vmatmul.mubr.msk.f32.vlgmr.msra.gmra.mrb[12].mxu0 %vm1069_vm7, %v1642_v57  ;;  %v4318_v57 = vpack.c.bf16 %v2170_v56, %v2169_v54 }
 0x910   : > { %4127 = vmatpush3.xpose.msk.msra.mxu0 %vm1069_vm7, %v1796_v59  ;;  %4128 = vmatprep.mubr.msk.f32.mxu0 %vm4524_vm0, %v4523_v9  ;;  %v2171_v59 = vld [vmem:[%s5260_s16 + $0x30] sm:$0xff] }
 0x911   : > { %4136 = vmatprep.subr.mxu0 %v4523_v9 }
 0x913   : > { %4129 = vmatmul.mubr.msk.f32.vlgmr.msra.gmra.mrb[14].mxu0 %vm1069_vm7, %v1794_v60  ;;  %v2172_v60 = vld [vmem:[%s5260_s16 + $0x38] sm:$0xff] }
 0x914   : > { %4138 = vmatprep.mubr.msk.f32.mxu0 %vm4524_vm0, %v4523_v9  ;;  %4137 = vmatpush3.msra.mxu0 %v985_v12  ;;  %v4321_v61 = vpack.c.bf16 %v2172_v60, %v2171_v59 }
 0x915   : > { %4311 = vmatprep.subr.bf16.mxu0 %v4522_v5 }
 0x9e2   : > { %v1715_v62 = vpop.f32.mrb[12].mxu0 }
 0x9e3   : > { %v4120_v63 = vpop.f32.mrb[13].mxu0  ;;  %4124 = vmatmul.mubr.msk.f32.vlgmr.msra.gmra.mrb[8].mxu1 %vm1069_vm7, %v1715_v62  ;;  %v3878_v62 = vld [vmem:[%s5259_s15] ss:$0 sm:$0xff] }
 0x9e4   : > { %4133 = vmatprep.mubr.msk.f32.mxu1 %vm4524_vm0, %v4523_v9 }
 0x9e6   : > { %v1867_v0 = vpop.f32.mrb[14].mxu0 }
 0x9e7   : > { %v1871_v1 = vmul.f32 0.35355338, %v1867_v0  ;;  %v4130_v2 = vpop.f32.mrb[15].mxu0 }
 0x9e9   : > { %v1872_v3 = vadd.f32 %v1871_v1, %v4747_v20 }
 0x9eb   : > { %v1873_v4 = vsel %vm1069_vm7, %v1872_v3, -inf }
 0x9ec   : > { %1874 = vmax.xlane.f32.xlu1 %v1873_v4 }
 0xa79   : > { %v1875_v6 = vpop.xlane.xlu1 %1874 }
 0xa7a   : > { %v1876_v7 = vsub.f32 %v1872_v3, %v1875_v6 }
 0xa7c   : > { %v1877_v8 = vmul.f32 1.442695, %v1876_v7 }
 0xa7e   : > { %4425 = vpow2.f32 %v1877_v8 }
 0xa88   : > { %v4426_v10 = vpop.eup %4425 }
 0xa89   : > { %v1879_v11 = vsel %vm1069_vm7, %v4426_v10, 0.0 }
 0xa8a   : > { %1880 = vadd.xlane.f32.xlu0 %v1879_v11 }
 0xaa0   : > { %1884 = vrot.lane.b32.xlu0 %v4798_v58, %s5282_s4  ;;  %s5327_s4 = sld [smem:[#allocation25_spill]] }
 0xab6   : > { %v1788_v13 = vpop.f32.mrb[8].mxu1 }
 0xab7   : > { %v1792_v14 = vadd.f32 %v1788_v13, %v1549_v41  ;;  %v4125_v15 = vpop.f32.mrb[9].mxu1  ;;  %v3880_v13 = vld [vmem:[%s5261_s17] ss:$0 sm:$0xff] }
 0xb17   : > { %v1881_v16 = vpop.xlane.xlu0 %1880 }
 0xb18   : > { %4427 = vrcp.f32 %v1881_v16 }
 0xb1b   : > { %v1885_v17 = vpop.permute.xlu0 %1884 }
 0xb1c   : > { %4132 = vmatpush3.msra.mxu1 %v1885_v17 }
 0xb1d   : > { %4305 = vmatprep.subr.bf16.mxu1 %v4522_v5 }
 0xb22   : > { %v4428_v18 = vpop.eup %4427 }
 0xb23   : > { %v1883_v19 = vmul.f32 %v4428_v18, %v4426_v10 }
 0xb25   : > { %4134 = vmatmul.mubr.msk.f32.vlgmr.msra.gmra.mrb[10].mxu1 %vm1069_vm7, %v1883_v19 }
 0xb26   : > { %4149 = vmatprep.mubr.msk.f32.mxu1 %vm4524_vm0, %v4523_v9  ;;  %4307 = vmatpush3.bf16.msra.mxu1 %v4306_v36  ;;  %v3883_v36 = vld [vmem:[%s5263_s19] ss:$0 sm:$0xff] }
 0xb27   : > { %4308 = vmatprep.subr.bf16.mxu1 %v4522_v5 }
 0xbf8   : > { %v1956_v58 = vpop.f32.mrb[10].mxu1 }
 0xbf9   : > { %v4135_v21 = vpop.f32.mrb[11].mxu1  ;;  %4139 = vmatmul.mubr.msk.f32.vlgmr.msra.gmra.mrb[16].mxu0 %vm1069_vm7, %v1956_v58 }
 0xbfa   : > { %4168 = vmatprep.mubr.msk.f32.mxu0 %vm4524_vm0, %v4523_v9  ;;  %4313 = vmatpush3.bf16.msra.mxu0 %v4312_v50 }
 0xbfb   : > { %4314 = vmatprep.subr.bf16.mxu0 %v4522_v5 }
 0xbfe   : > { %4316 = vmatpush3.bf16.msra.mxu0 %v4315_v53 }
 0xbff   : > { %4317 = vmatprep.subr.bf16.mxu0 %v4522_v5 }
 0xc02   : > { %4319 = vmatpush3.bf16.msra.mxu0 %v4318_v57 }
 0xc03   : > { %4320 = vmatprep.subr.bf16.mxu0 %v4522_v5 }
 0xc06   : > { %4322 = vmatpush3.bf16.msra.mxu0 %v4321_v61 }
 0xc07   : > { %4187 = vmatprep.subr.mxu0 %v4523_v9 }
 0xccc   : > { %v2029_v22 = vpop.f32.mrb[16].mxu0 }
 0xccd   : > { %v2033_v24 = vadd.f32 %v2029_v22, %v1792_v14  ;;  %v4140_v25 = vpop.f32.mrb[17].mxu0 }
 0xcce   : > { %v3885_v25 = vld [vmem:[%s5315_s30 + $0x28] sm:$0xff] }
 0xccf   : > { %v2041_v26 = vadd.f32 %v3875_v23, %v2033_v24  ;;  %v3884_v24 = vld [vmem:[%s5315_s30 + $0x20] sm:$0xff] }
 0xcd1   : > { %v2042_v27 = vadd.f32 %v2041_v26, %v4789_v55  ;;  %v2074_v55 = vld [vmem:[%s5258_s14 + $0x10] sm:$0xff]  ;;  %v4324_v26 = vpack.c.bf16 %v3885_v25, %v3884_v24 }
 0xcd2   : > { %v4309_v38 = vpack.c.bf16 %v2075_v37, %v2074_v55 }
 0xcd3   : > { %v2045_v28 = vsel %vm946_vm6, %v2042_v27, 0.0 }
 0xcd4   : > { %2046 = vadd.xlane.f32.xlu1 %v2045_v28  ;;  %4310 = vmatpush3.bf16.msra.mxu1 %v4309_v38  ;;  %v3887_v28 = vld [vmem:[%s5315_s30 + $0x38] sm:$0xff]  ;;  %v3893_v38 = vld [vmem:[%s5253_s9 + $0x1] ss:$0 sm:$0xff] }
 0xcd5   : > { %4323 = vmatprep.subr.bf16.mxu1 %v4522_v5 }
 0xd61   : > { %v2047_v29 = vpop.xlane.xlu1 %2046 }
 0xd62   : > { %v2048_v30 = vmul.f32 0.03125, %v2047_v29 }
 0xd64   : > { %v2049_v31 = vsub.f32 %v2042_v27, %v2048_v30  ;;  %v3886_v27 = vld [vmem:[%s5315_s30 + $0x30] sm:$0xff] }
 0xd65   : > { %v4327_v29 = vpack.c.bf16 %v3887_v28, %v3886_v27 }
 0xd66   : > { %v2050_v32 = vmul.f32 %v2049_v31, %v2049_v31 }
 0xd68   : > { %v2051_v33 = vsel %vm946_vm6, %v2050_v32, 0.0 }
 0xd69   : > { %2052 = vadd.xlane.f32.xlu1 %v2051_v33 }
 0xdf6   : > { %v2053_v39 = vpop.xlane.xlu1 %2052 }
 0xdf7   : > { %v2054_v40 = vmul.f32 0.03125, %v2053_v39 }
 0xdf9   : > { %v2055_v41 = vadd.f32 1e-12, %v2054_v40 }
 0xdfb   : > { %4429 = vrsqrt.f32 %v2055_v41 }
 0xe05   : > { %v4430_v42 = vpop.eup %4429 }
 0xe06   : > { %v2057_v44 = vmul.f32 %v4430_v42, %v2049_v31 }
 0xe08   : > { %v2064_v46 = vmul.f32 %v3876_v43, %v2057_v44 }
 0xe0a   : > { %v2071_v47 = vadd.f32 %v3877_v45, %v2064_v46 }
 0xe0c   : > { %4150 = vmatmul.mubr.msk.f32.vlgmr.msra.gmra.mrb[12].mxu1 %vm946_vm6, %v2071_v47 }
 0xe0d   : > { %4179 = vmatprep.mubr.msk.f32.mxu1 %vm4524_vm0, %v4523_v9  ;;  %4325 = vmatpush3.bf16.msra.mxu1 %v4324_v26 }
 0xe0e   : > { %4326 = vmatprep.subr.bf16.mxu1 %v4522_v5 }
 0xe11   : > { %4328 = vmatpush3.bf16.msra.mxu1 %v4327_v29 }
 0xe12   : > { %4182 = vmatprep.subr.mxu1 %v4523_v9 }
 0xedf   : > { %v2152_v63 = vpop.f32.mrb[12].mxu1 }
 0xee0   : > { %v2153_v0 = vadd.f32 %v3878_v62, %v2152_v63  ;;  %v4151_v1 = vpop.f32.mrb[13].mxu1 }
 0xee2   : > { %v2157_v2 = vmul.f32 0.044715, %v2153_v0  ;;  %v2156_v10 = vmul.f32 0.5, %v2153_v0 }
 0xee4   : > { %v2158_v3 = vmul.f32 %v2157_v2, %v2153_v0 }
 0xee6   : > { %v2159_v4 = vmul.f32 %v2158_v3, %v2153_v0  ;;  %v3889_v3 = vld [vmem:[%s5254_s10 + $0x28] sm:$0xff] }
 0xee8   : > { %v2160_v6 = vadd.f32 %v2159_v4, %v2153_v0 }
 0xeea   : > { %v2161_v7 = vmul.f32 0.7978846, %v2160_v6 }
 0xeec   : > { %4431 = vtanh.f32 %v2161_v7 }
 0xef6   : > { %v4432_v8 = vpop.eup %4431 }
 0xef7   : > { %v2163_v11 = vadd.f32 1.0, %v4432_v8 }
 0xef9   : > { %v2164_v12 = vmul.f32 %v2163_v11, %v2156_v10 }
 0xefb   : > { %4169 = vmatmul.mubr.msk.f32.vlgmr.msra.gmra.mrb[18].mxu0 %vm2180_vm8, %v2164_v12 }
 0xefc   : > { %4189 = vmatprep.mubr.msk.f32.mxu0 %vm4524_vm0, %v4523_v9 }
 0xfce   : > { %v2250_v14 = vpop.f32.mrb[18].mxu0 }
 0xfcf   : > { %v2251_v15 = vadd.f32 %v3880_v13, %v2250_v14  ;;  %v4170_v16 = vpop.f32.mrb[19].mxu0  ;;  %v3888_v14 = vld [vmem:[%s5254_s10 + $0x20] sm:$0xff] }
 0xfd1   : > { %v2254_v17 = vadd.f32 %v2251_v15, %v2071_v47 }
 0xfd3   : > { %v2257_v18 = vsel %vm946_vm6, %v2254_v17, 0.0 }
 0xfd4   : > { %2258 = vadd.xlane.f32.xlu1 %v2257_v18 }
0x1061   : > { %v2259_v19 = vpop.xlane.xlu1 %2258 }
0x1062   : > { %v2260_v58 = vmul.f32 0.03125, %v2259_v19 }
0x1064   : > { %v2261_v21 = vsub.f32 %v2254_v17, %v2260_v58 }
0x1066   : > { %v2262_v22 = vmul.f32 %v2261_v21, %v2261_v21 }
0x1068   : > { %v2263_v23 = vsel %vm946_vm6, %v2262_v22, 0.0 }
0x1069   : > { %2264 = vadd.xlane.f32.xlu1 %v2263_v23 }
0x10f6   : > { %v2265_v30 = vpop.xlane.xlu1 %2264 }
0x10f7   : > { %v2266_v31 = vmul.f32 0.03125, %v2265_v30 }
0x10f9   : > { %v2267_v32 = vadd.f32 1e-12, %v2266_v31 }
0x10fb   : > { %4433 = vrsqrt.f32 %v2267_v32 }
0x1105   : > { %v4434_v33 = vpop.eup %4433 }
0x1106   : > { %v2269_v35 = vmul.f32 %v4434_v33, %v2261_v21 }
0x1108   : > { %v2276_v55 = vmul.f32 %v3882_v34, %v2269_v35 }
0x110a   : > { %v4987_v37 = vadd.f32 %v3883_v36, %v2276_v55 }
0x110c   : > { %4180 = vmatmul.mubr.msk.f32.vlgmr.msra.gmra.mrb[14].mxu1 %vm946_vm6, %v4987_v37 }
0x110d   : > { %4184 = vmatprep.mubr.msk.f32.mxu1 %vm4524_vm0, %v4523_v9 }
0x11df   : > { %v2371_v39 = vpop.f32.mrb[14].mxu1 }
0x11e0   : > { %v4996_v40 = vadd.f32 %v3893_v38, %v2371_v39  ;;  %v4181_v41 = vpop.f32.mrb[15].mxu1 }
0x11e2   : > { %2543 = vrot.lane.b32.xlu0 %v4996_v40, %s4525_s25  ;;  %2376 = vrot.lane.b32.xlu1 %v4996_v40, %s4526_s8  ;;  %s5202_s25 = scalar_lea.hbm %s5327_s4, %s3941_s22 }
0x11e6   : > { %2541 = vrot.lane.b32.xlu0 %v4996_v40, %s4527_s2  ;;  %s5324_s2 = sld [smem:[#allocation22_spill]] }
0x1254   : > { %v2377_v42 = vpop.permute.xlu1 %2376  ;;  %v2544_v43 = vpop.permute.xlu0 %2543 }
0x1255   : > { %4183 = vmatpush3.xpose.msk.msra.mxu1 %vm1069_vm7, %v2377_v42 }
0x1256   : > { %4192 = vmatprep.subr.mxu1 %v4523_v9 }
0x1258   : > { %4185 = vmatmul.mubr.msk.f32.vlgmr.msra.gmra.mrb[16].mxu1 %vm1069_vm7, %v4996_v40  ;;  %v2542_v44 = vpop.permute.xlu0 %2541 }
0x1259   : > { %4193 = vmatpush3.xpose.msk.msra.mxu1 %vm1069_vm7, %v2544_v43  ;;  %4194 = vmatprep.mubr.msk.f32.mxu1 %vm4524_vm0, %v4523_v9  ;;  %v3890_v43 = vld [vmem:[%s5254_s10 + $0x30] sm:$0xff] }
0x125a   : > { %4202 = vmatprep.subr.mxu1 %v4523_v9 }
0x125c   : > { %4195 = vmatmul.mubr.msk.f32.vlgmr.msra.gmra.mrb[18].mxu1 %vm1069_vm7, %v2542_v44 }
0x125d   : > { %4204 = vmatprep.mubr.msk.f32.mxu1 %vm4524_vm0, %v4523_v9  ;;  %4203 = vmatpush3.msra.mxu1 %v3889_v3  ;;  %v3912_v3 = vld [vmem:[%s5255_s11 + $0x1] ss:$0 sm:$0xff] }
0x125e   : > { %4212 = vmatprep.subr.mxu1 %v4523_v9 }
0x132b   : > { %v2448_v45 = vpop.f32.mrb[16].mxu1 }
0x132c   : > { %v2452_v46 = vmul.f32 0.35355338, %v2448_v45  ;;  %v4186_v47 = vpop.f32.mrb[17].mxu1 }
0x132e   : > { %v2453_v48 = vadd.f32 %v2452_v46, %v4747_v20 }
0x132f   : > { %v2615_v49 = vpop.f32.mrb[18].mxu1 }
0x1330   : > { %v2619_v50 = vmul.f32 0.35355338, %v2615_v49  ;;  %v4196_v51 = vpop.f32.mrb[19].mxu1  ;;  %v2454_v52 = vsel %vm1069_vm7, %v2453_v48, -inf }
0x1331   : > { %2455 = vmax.xlane.f32.xlu0 %v2454_v52 }
0x1332   : > { %v2620_v53 = vadd.f32 %v2619_v50, %v4747_v20 }
0x1334   : > { %v2621_v54 = vsel %vm1069_vm7, %v2620_v53, -inf }
0x1335   : > { %2622 = vmax.xlane.f32.xlu1 %v2621_v54 }
0x1346   : > { %2632 = vrot.lane.b32.xlu1 %v4996_v40, %s4528_s0 }
0x134a   : > { %2856 = vrot.lane.b32.xlu1 %v4996_v40, %s4531_s29  ;;  %s5320_s29 = smov 48  }
0x13be   : > { %v2456_v56 = vpop.xlane.xlu0 %2455 }
0x13bf   : > { %v2457_v57 = vsub.f32 %v2453_v48, %v2456_v56 }
0x13c1   : > { %v2458_v59 = vmul.f32 1.442695, %v2457_v57 }
0x13c2   : > { %v2623_v60 = vpop.xlane.xlu1 %2622 }
0x13c3   : > { %4435 = vpow2.f32 %v2458_v59  ;;  %v2624_v61 = vsub.f32 %v2620_v53, %v2623_v60 }
0x13c5   : > { %v2625_v62 = vmul.f32 1.442695, %v2624_v61 }
0x13c6   : > { %v2633_v11 = vpop.permute.xlu1 %2632 }
0x13c7   : > { %4437 = vpow2.f32 %v2625_v62 }
0x13ca   : > { %v2857_v18 = vpop.permute.xlu1 %2856 }
0x13cd   : > { %v4436_v63 = vpop.eup %4435 }
0x13ce   : > { %v2460_v0 = vsel %vm1069_vm7, %v4436_v63, 0.0 }
0x13cf   : > { %2461 = vadd.xlane.f32.xlu0 %v2460_v0 }
0x13d1   : > { %v4438_v1 = vpop.eup %4437 }
0x13d2   : > { %v2627_v2 = vsel %vm1069_vm7, %v4438_v1, 0.0 }
0x13d3   : > { %2628 = vadd.xlane.f32.xlu0 %v2627_v2 }
0x13e9   : > { %2465 = vrot.lane.b32.xlu0 %v4996_v40, %s4530_s27  ;;  %s5319_s27 = smov 104  }
0x13ed   : > { %2854 = vrot.lane.b32.xlu0 %v4996_v40, %s4529_s7  ;;  %s5318_s7 = smov 72  }
0x145c   : > { %v2462_v4 = vpop.xlane.xlu0 %2461 }
0x145d   : > { %4439 = vrcp.f32 %v2462_v4 }
0x1460   : > { %v2629_v6 = vpop.xlane.xlu0 %2628 }
0x1461   : > { %4441 = vrcp.f32 %v2629_v6 }
0x1464   : > { %v2466_v7 = vpop.permute.xlu0 %2465 }
0x1465   : > { %4188 = vmatpush3.msra.mxu0 %v2466_v7 }
0x1466   : > { %4197 = vmatprep.subr.mxu0 %v4523_v9 }
0x1467   : > { %v4440_v8 = vpop.eup %4439 }
0x1468   : > { %v2464_v10 = vmul.f32 %v4440_v8, %v4436_v63  ;;  %v2855_v58 = vpop.permute.xlu0 %2854 }
0x146a   : > { %4190 = vmatmul.mubr.msk.f32.vlgmr.msra.gmra.mrb[20].mxu0 %vm1069_vm7, %v2464_v10 }
0x146b   : > { %v4442_v12 = vpop.eup %4441  ;;  %4198 = vmatpush3.msra.mxu0 %v2633_v11  ;;  %4199 = vmatprep.mubr.msk.f32.mxu0 %vm4524_vm0, %v4523_v9 }
0x146c   : > { %v2631_v13 = vmul.f32 %v4442_v12, %v4438_v1  ;;  %4207 = vmatprep.subr.mxu0 %v4523_v9 }
0x146e   : > { %4200 = vmatmul.mubr.msk.f32.vlgmr.msra.gmra.mrb[22].mxu0 %vm1069_vm7, %v2631_v13 }
0x146f   : > { %4209 = vmatprep.mubr.msk.f32.mxu0 %vm4524_vm0, %v4523_v9  ;;  %4208 = vmatpush3.msra.mxu0 %v3888_v14 }
0x1470   : > { %4217 = vmatprep.subr.mxu0 %v4523_v9 }
0x153d   : > { %v2537_v15 = vpop.f32.mrb[20].mxu0 }
0x153e   : > { %v4191_v16 = vpop.f32.mrb[21].mxu0  ;;  %4210 = vmatmul.mubr.msk.f32.vlgmr.msra.gmra.mrb[24].mxu0 %vm1069_vm7, %v2537_v15 }
0x153f   : > { %4219 = vmatprep.mubr.msk.f32.mxu0 %vm4524_vm0, %v4523_v9  ;;  %v3917_v16 = vld [vmem:[%s5258_s14 + $0x20] sm:$0xff] }
0x1541   : > { %v2704_v17 = vpop.f32.mrb[22].mxu0 }
0x1542   : > { %v4201_v19 = vpop.f32.mrb[23].mxu0  ;;  %4205 = vmatmul.mubr.msk.f32.vlgmr.msra.gmra.mrb[20].mxu1 %vm1069_vm7, %v2704_v17  ;;  %v3918_v17 = vld [vmem:[%s5258_s14 + $0x28] sm:$0xff] }
0x1543   : > { %4213 = vmatpush3.xpose.msk.msra.mxu1 %vm1069_vm7, %v2857_v18  ;;  %4214 = vmatprep.mubr.msk.f32.mxu1 %vm4524_vm0, %v4523_v9  ;;  %v4330_v18 = vpack.c.bf16 %v3918_v17, %v3917_v16  ;;  %v3920_v19 = vld [vmem:[%s5258_s14 + $0x38] sm:$0xff]  ;;  %v3938_v17 = vld [vmem:[%s5263_s19 + $0x1] ss:$0 sm:$0xff] }
0x1544   : > { %4222 = vmatprep.subr.mxu1 %v4523_v9 }
0x1546   : > { %4215 = vmatmul.mubr.msk.f32.vlgmr.msra.gmra.mrb[22].mxu1 %vm1069_vm7, %v2855_v58 }
0x1547   : > { %4224 = vmatprep.mubr.msk.f32.mxu1 %vm4524_vm0, %v4523_v9  ;;  %4223 = vmatpush3.msra.mxu1 %v3890_v43  ;;  %v3922_v43 = vld [vmem:[%s5259_s15 + $0x1] ss:$0 sm:$0xff] }
0x1548   : > { %4232 = vmatprep.subr.mxu1 %v4523_v9 }
0x1611   : > { %v2850_v21 = vpop.f32.mrb[24].mxu0 }
0x1612   : > { %v4211_v22 = vpop.f32.mrb[25].mxu0 }
0x1615   : > { %v2777_v23 = vpop.f32.mrb[20].mxu1 }
0x1616   : > { %v2851_v24 = vadd.f32 %v2850_v21, %v2777_v23  ;;  %v4206_v25 = vpop.f32.mrb[21].mxu1 }
0x1617   : > { %v3915_v25 = vld [vmem:[%s5256_s12 + $0x1] ss:$0 sm:$0xff] }
0x1619   : > { %v2928_v26 = vpop.f32.mrb[22].mxu1 }
0x161a   : > { %v2932_v27 = vmul.f32 0.35355338, %v2928_v26  ;;  %v4216_v28 = vpop.f32.mrb[23].mxu1 }
0x161c   : > { %v2933_v29 = vadd.f32 %v2932_v27, %v4747_v20  ;;  %v3916_v27 = vld [vmem:[%s5257_s13 + $0x1] ss:$0 sm:$0xff] }
0x161e   : > { %v2934_v30 = vsel %vm1069_vm7, %v2933_v29, -inf }
0x161f   : > { %2935 = vmax.xlane.f32.xlu1 %v2934_v30  ;;  %v3924_v30 = vld [vmem:[%s5260_s16 + $0x40] sm:$0xff] }
0x1630   : > { %3097 = vrot.lane.b32.xlu1 %v4996_v40, %s5318_s7  ;;  %s750_s7 = sand.u32 1, %s4511_s26  }
0x1631   : > { %s3755_s8 = scalar_lea.sflag [#allocation3], %s750_s7 }
0x1634   : > { %3095 = vrot.lane.b32.xlu1 %v4996_v40, %s5319_s27  ;;  %s4461_s27 = sshll.u32 %s4536_s3, 4  ;;  %s4462_s27 = int_to_ptr.vmem [resolvable:$false] %s4461_s27 }
0x16ac   : > { %v2936_v31 = vpop.xlane.xlu1 %2935 }
0x16ad   : > { %v2937_v32 = vsub.f32 %v2933_v29, %v2936_v31  ;;  %v3925_v31 = vld [vmem:[%s5260_s16 + $0x48] sm:$0xff] }
0x16af   : > { %v2938_v33 = vmul.f32 1.442695, %v2937_v32  ;;  %v4336_v32 = vpack.c.bf16 %v3925_v31, %v3924_v30 }
0x16b0   : > { %v3098_v39 = vpop.permute.xlu1 %3097 }
0x16b1   : > { %4443 = vpow2.f32 %v2938_v33  ;;  %v3926_v33 = vld [vmem:[%s5260_s16 + $0x50] sm:$0xff] }
0x16b4   : > { %v3096_v42 = vpop.permute.xlu1 %3095 }
0x16bb   : > { %v4444_v34 = vpop.eup %4443 }
0x16bc   : > { %v2940_v35 = vsel %vm1069_vm7, %v4444_v34, 0.0 }
0x16bd   : > { %2941 = vadd.xlane.f32.xlu0 %v2940_v35 }
0x16d3   : > { %2945 = vrot.lane.b32.xlu0 %v4996_v40, %s5320_s29  ;;  %s4463_s29 = scalar_lea.vmem %s4462_s27, 32 }
0x174a   : > { %v2942_v36 = vpop.xlane.xlu0 %2941 }
0x174b   : > { %4445 = vrcp.f32 %v2942_v36  ;;  %v3928_v36 = vld [vmem:[%s5260_s16 + $0x60] sm:$0xff] }
0x174e   : > { %v2946_v55 = vpop.permute.xlu0 %2945 }
0x174f   : > { %4218 = vmatpush3.msra.mxu0 %v2946_v55  ;;  %v3929_v55 = vld [vmem:[%s5260_s16 + $0x68] sm:$0xff] }
0x1750   : > { %4227 = vmatprep.subr.mxu0 %v4523_v9 }
0x1755   : > { %v4446_v38 = vpop.eup %4445 }
0x1756   : > { %v2944_v41 = vmul.f32 %v4446_v38, %v4444_v34  ;;  %v3927_v34 = vld [vmem:[%s5260_s16 + $0x58] sm:$0xff]  ;;  %v4342_v38 = vpack.c.bf16 %v3929_v55, %v3928_v36 }
0x1757   : > { %v4339_v35 = vpack.c.bf16 %v3927_v34, %v3926_v33 }
0x1758   : > { %4220 = vmatmul.mubr.msk.f32.vlgmr.msra.gmra.mrb[26].mxu0 %vm1069_vm7, %v2944_v41  ;;  %v3931_v41 = vld [vmem:[%s5260_s16 + $0x78] sm:$0xff] }
0x1759   : > { %4228 = vmatpush3.xpose.msk.msra.mxu0 %vm1069_vm7, %v3098_v39  ;;  %4229 = vmatprep.mubr.msk.f32.mxu0 %vm4524_vm0, %v4523_v9  ;;  %v3930_v39 = vld [vmem:[%s5260_s16 + $0x70] sm:$0xff] }
0x175a   : > { %4237 = vmatprep.subr.mxu0 %v4523_v9 }
0x175c   : > { %4230 = vmatmul.mubr.msk.f32.vlgmr.msra.gmra.mrb[28].mxu0 %vm1069_vm7, %v3096_v42  ;;  %v4345_v42 = vpack.c.bf16 %v3931_v41, %v3930_v39 }
0x175d   : > { %4239 = vmatprep.mubr.msk.f32.mxu0 %vm4524_vm0, %v4523_v9 }
0x182b   : > { %v3017_v44 = vpop.f32.mrb[26].mxu0 }
0x182c   : > { %v4221_v45 = vpop.f32.mrb[27].mxu0  ;;  %4225 = vmatmul.mubr.msk.f32.vlgmr.msra.gmra.mrb[24].mxu1 %vm1069_vm7, %v3017_v44 }
0x182d   : > { %4234 = vmatprep.mubr.msk.f32.mxu1 %vm4524_vm0, %v4523_v9 }
0x182f   : > { %v3169_v46 = vpop.f32.mrb[28].mxu0 }
0x1830   : > { %v3173_v47 = vmul.f32 0.35355338, %v3169_v46  ;;  %v4231_v48 = vpop.f32.mrb[29].mxu0 }
0x1832   : > { %v3174_v49 = vadd.f32 %v3173_v47, %v4747_v20  ;;  %v3891_v20 = vld [vmem:[%s5254_s10 + $0x38] sm:$0xff] }
0x1833   : > { %4238 = vmatpush3.msra.mxu0 %v3891_v20 }
0x1834   : > { %v3175_v50 = vsel %vm1069_vm7, %v3174_v49, -inf  ;;  %4335 = vmatprep.subr.bf16.mxu0 %v4522_v5 }
0x1835   : > { %3176 = vmax.xlane.f32.xlu0 %v3175_v50 }
0x184b   : > { %3186 = vrot.lane.b32.xlu0 %v4996_v40, %s5321_s24  ;;  %s751_s24 = scalar_lea.vmem [#allocation2], %s750_s7 }
0x184c   : > { %s3767_s5 = sshll.u32 %s751_s24, 4  ;;  %s5204_s5 = int_to_ptr.vmem [resolvable:$true] %s3767_s5 }
0x184d   : > { %p4464_p0 = scmp.lt.s32.totalorder %s5204_s5, %s4462_s27 }
0x18c2   : > { %v3177_v51 = vpop.xlane.xlu0 %3176 }
0x18c3   : > { %v3178_v52 = vsub.f32 %v3174_v49, %v3177_v51 }
0x18c5   : > { %v3179_v53 = vmul.f32 1.442695, %v3178_v52 }
0x18c6   : > { %v3187_v54 = vpop.permute.xlu0 %3186 }
0x18c7   : > { %4447 = vpow2.f32 %v3179_v53  ;;  %4233 = vmatpush3.msra.mxu1 %v3187_v54 }
0x18c8   : > { %4329 = vmatprep.subr.bf16.mxu1 %v4522_v5 }
0x18d1   : > { %v4448_v56 = vpop.eup %4447 }
0x18d2   : > { %v3181_v57 = vsel %vm1069_vm7, %v4448_v56, 0.0 }
0x18d3   : > { %3182 = vadd.xlane.f32.xlu1 %v3181_v57  ;;  %v3933_v57 = vld [vmem:[%s5261_s17 + $0x1] ss:$0 sm:$0xff] }
0x18ff   : > { %v3090_v40 = vpop.f32.mrb[24].mxu1 }
0x1900   : > { %v3094_v59 = vadd.f32 %v3090_v40, %v2851_v24  ;;  %v4226_v60 = vpop.f32.mrb[25].mxu1 }
0x1960   : > { %v3183_v61 = vpop.xlane.xlu1 %3182 }
0x1961   : > { %4449 = vrcp.f32 %v3183_v61 }
0x196b   : > { %v4450_v62 = vpop.eup %4449 }
0x196c   : > { %v3185_v63 = vmul.f32 %v4450_v62, %v4448_v56 }
0x196e   : > { %4235 = vmatmul.mubr.msk.f32.vlgmr.msra.gmra.mrb[26].mxu1 %vm1069_vm7, %v3185_v63 }
0x196f   : > { %4250 = vmatprep.mubr.msk.f32.mxu1 %vm4524_vm0, %v4523_v9  ;;  %4331 = vmatpush3.bf16.msra.mxu1 %v4330_v18 }
0x1970   : > { %4332 = vmatprep.subr.bf16.mxu1 %v4522_v5 }
0x1a41   : > { %v3258_v0 = vpop.f32.mrb[26].mxu1 }
0x1a42   : > { %v4236_v1 = vpop.f32.mrb[27].mxu1  ;;  %4240 = vmatmul.mubr.msk.f32.vlgmr.msra.gmra.mrb[30].mxu0 %vm1069_vm7, %v3258_v0 }
0x1a43   : > { %4269 = vmatprep.mubr.msk.f32.mxu0 %vm4524_vm0, %v4523_v9  ;;  %4337 = vmatpush3.bf16.msra.mxu0 %v4336_v32 }
0x1a44   : > { %4338 = vmatprep.subr.bf16.mxu0 %v4522_v5 }
0x1a47   : > { %4340 = vmatpush3.bf16.msra.mxu0 %v4339_v35 }
0x1a48   : > { %4341 = vmatprep.subr.bf16.mxu0 %v4522_v5 }
0x1a4b   : > { %4343 = vmatpush3.bf16.msra.mxu0 %v4342_v38 }
0x1a4c   : > { %4344 = vmatprep.subr.bf16.mxu0 %v4522_v5 }
0x1a4f   : > { %4346 = vmatpush3.bf16.msra.mxu0 %v4345_v42 }
0x1b15   : > { %v3331_v2 = vpop.f32.mrb[30].mxu0 }
0x1b16   : > { %v3335_v4 = vadd.f32 %v3331_v2, %v3094_v59  ;;  %v4241_v6 = vpop.f32.mrb[31].mxu0 }
0x1b18   : > { %v3344_v7 = vadd.f32 %v3912_v3, %v3335_v4  ;;  %v3594_v3 = vld [vmem:[%s5264_s20] sm:$0xff]  ;;  %v3595_v4 = vld [vmem:[%s5264_s20 + $0x8] sm:$0xff] }
0x1b19   : > { %v4348_v6 = vpack.c.bf16 %v3595_v4, %v3594_v3 }
0x1b1a   : > { %v3345_v8 = vadd.f32 %v3344_v7, %v4987_v37  ;;  %v3919_v37 = vld [vmem:[%s5258_s14 + $0x30] sm:$0xff] }
0x1b1b   : > { %v4333_v58 = vpack.c.bf16 %v3920_v19, %v3919_v37  ;;  %v3596_v7 = vld [vmem:[%s5264_s20 + $0x10] sm:$0xff]  ;;  %v3676_v19 = vld [vmem:[%s5322_s6 + $0x8] sm:$0xff] }
0x1b1c   : > { %v3350_v10 = vsel %vm946_vm6, %v3345_v8, 0.0 }
0x1b1d   : > { %3351 = vadd.xlane.f32.xlu1 %v3350_v10  ;;  %4334 = vmatpush3.bf16.msra.mxu1 %v4333_v58 }
0x1b1e   : > { %4347 = vmatprep.subr.bf16.mxu1 %v4522_v5 }
0x1baa   : > { %v3352_v11 = vpop.xlane.xlu1 %3351 }
0x1bab   : > { %v3353_v12 = vmul.f32 0.03125, %v3352_v11 }
0x1bad   : > { %v3354_v13 = vsub.f32 %v3345_v8, %v3353_v12  ;;  %v3597_v8 = vld [vmem:[%s5264_s20 + $0x18] sm:$0xff] }
0x1bae   : > { %v4351_v10 = vpack.c.bf16 %v3597_v8, %v3596_v7 }
0x1baf   : > { %v3355_v14 = vmul.f32 %v3354_v13, %v3354_v13 }
0x1bb1   : > { %v3356_v15 = vsel %vm946_vm6, %v3355_v14, 0.0 }
0x1bb2   : > { %3357 = vadd.xlane.f32.xlu1 %v3356_v15  ;;  %v3937_v15 = vld [vmem:[%s5262_s18 + $0x1] ss:$0 sm:$0xff] }
0x1c3f   : > { %v3358_v21 = vpop.xlane.xlu1 %3357 }
0x1c40   : > { %v3359_v22 = vmul.f32 0.03125, %v3358_v21  ;;  %v3598_v21 = vld [vmem:[%s5324_s2] sm:$0x1]  ;;  %s4457_s2 = scalar_lea.vmem %s5204_s5, 16 }
0x1c41   : > { %p4458_p11 = scmp.ne.s32.totalorder %s5204_s5, %s4457_s2  ;;  %p4465_p1 = scmp.lt.s32.totalorder %s4463_s29, %s4457_s2 }
0x1c42   : > { %v3360_v23 = vadd.f32 1e-12, %v3359_v22 }
0x1c43   : > { %p4459_p12 = pnand %p4458_p11, %p4700_p5  ;;  %p4466_p2 = por %p4465_p1, %p4464_p0 }
0x1c44   : > { %4451 = vrsqrt.f32 %v3360_v23 }
0x1c45   : > { %p4460_p13 = pneg %p4459_p12 }
0x1c47   : > { %p4467_p3 = pnand %p4466_p2, %p4460_p13 }
0x1c4e   : > { %v4452_v24 = vpop.eup %4451 }
0x1c4f   : > { %v3362_v26 = vmul.f32 %v4452_v24, %v3354_v13 }
0x1c51   : > { %v3369_v28 = vmul.f32 %v3915_v25, %v3362_v26  ;;  %v3677_v26 = vld [vmem:[%s5326_s28] sm:$0x1] }
0x1c53   : > { %v3376_v29 = vadd.f32 %v3916_v27, %v3369_v28 }
0x1c55   : > { %4251 = vmatmul.mubr.msk.f32.vlgmr.msra.gmra.mrb[28].mxu1 %vm946_vm6, %v3376_v29 }
0x1c56   : > { %4280 = vmatprep.mubr.msk.f32.mxu1 %vm4524_vm0, %v4523_v9  ;;  %4349 = vmatpush3.bf16.msra.mxu1 %v4348_v6 }
0x1c57   : > { %4350 = vmatprep.subr.bf16.mxu1 %v4522_v5 }
0x1c5a   : > { %4352 = vmatpush3.bf16.msra.mxu1 %v4351_v10 }
0x1c5b   : > { %4353 = vmatprep.subr.bf16.mxu1 %v4522_v5  ;;  %v3675_v5 = vld [vmem:[%s5322_s6] sm:$0xff] }
0x1c5c   : > { %v4354_v58 = vpack.c.bf16 %v3676_v19, %v3675_v5 }
0x1d28   : > { %v3459_v44 = vpop.f32.mrb[28].mxu1 }
0x1d29   : > { %v3460_v45 = vadd.f32 %v3922_v43, %v3459_v44  ;;  %v4252_v46 = vpop.f32.mrb[29].mxu1 }
0x1d2b   : > { %v3464_v47 = vmul.f32 0.044715, %v3460_v45  ;;  %v3463_v53 = vmul.f32 0.5, %v3460_v45 }
0x1d2d   : > { %v3465_v48 = vmul.f32 %v3464_v47, %v3460_v45 }
0x1d2f   : > { %v3466_v49 = vmul.f32 %v3465_v48, %v3460_v45 }
0x1d31   : > { %v3467_v50 = vadd.f32 %v3466_v49, %v3460_v45 }
0x1d33   : > { %v3468_v51 = vmul.f32 0.7978846, %v3467_v50 }
0x1d35   : > { %4453 = vtanh.f32 %v3468_v51 }
0x1d3f   : > { %v4454_v52 = vpop.eup %4453 }
0x1d40   : > { %v3470_v54 = vadd.f32 1.0, %v4454_v52 }
0x1d42   : > { %v3471_v56 = vmul.f32 %v3470_v54, %v3463_v53 }
0x1d44   : > { %4270 = vmatmul.mubr.msk.f32.vlgmr.msra.gmra.mrb[32].mxu0 %vm2180_vm8, %v3471_v56 }
0x1e17   : > { %v3558_v20 = vpop.f32.mrb[32].mxu0 }
0x1e18   : > { %v3559_v40 = vadd.f32 %v3933_v57, %v3558_v20  ;;  %v4271_v59 = vpop.f32.mrb[33].mxu0 }
0x1e1a   : > { %v3562_v60 = vadd.f32 %v3559_v40, %v3376_v29 }
0x1e1c   : > { %v3567_v61 = vsel %vm946_vm6, %v3562_v60, 0.0 }
0x1e1d   : > { %3568 = vadd.xlane.f32.xlu1 %v3567_v61 }
0x1eaa   : > { %v3569_v62 = vpop.xlane.xlu1 %3568 }
0x1eab   : > { %v3570_v63 = vmul.f32 0.03125, %v3569_v62 }
0x1ead   : > { %v3571_v0 = vsub.f32 %v3562_v60, %v3570_v63 }
0x1eaf   : > { %v3572_v1 = vmul.f32 %v3571_v0, %v3571_v0 }
0x1eb1   : > { %v3573_v2 = vsel %vm946_vm6, %v3572_v1, 0.0 }
0x1eb2   : > { %3574 = vadd.xlane.f32.xlu1 %v3573_v2 }
0x1f3f   : > { %v3575_v11 = vpop.xlane.xlu1 %3574 }
0x1f40   : > { %v3576_v12 = vmul.f32 0.03125, %v3575_v11 }
0x1f42   : > { %v3577_v13 = vadd.f32 1e-12, %v3576_v12 }
0x1f44   : > { %4455 = vrsqrt.f32 %v3577_v13 }
0x1f4e   : > { %v4456_v14 = vpop.eup %4455 }
0x1f4f   : > { %v3579_v16 = vmul.f32 %v4456_v14, %v3571_v0 }
0x1f51   : > { %v3586_v18 = vmul.f32 %v3937_v15, %v3579_v16 }
0x1f53   : > { %v3593_v37 = vadd.f32 %v3938_v17, %v3586_v18 }
0x1f55   : > { %4281 = vmatmul.mubr.msk.f32.vlgmr.msra.gmra.mrb[30].mxu1 %vm946_vm6, %v3593_v37 }
0x1f56   : > { %4287 = vmatprep.mubr.msk.f32.mxu1 %vm4524_vm0, %v4523_v9  ;;  %4355 = vmatpush3.bf16.msra.mxu1 %v4354_v58 }
0x2028   : > { %v3668_v22 = vpop.f32.mrb[30].mxu1 }
0x2029   : > { %v3669_v23 = vadd.f32 %v3668_v22, %v3598_v21  ;;  %v4282_v24 = vpop.f32.mrb[31].mxu1 }
0x202b   : > { %vm3672_vm9 = vcmp.ge.f32.partialorder %v3669_v23, 0.0  ;;  %v3673_v9 = vmul.f32 0.01, %v3669_v23 }
0x202d   : > { %v3674_v25 = vsel %vm3672_vm9, %v3669_v23, %v3673_v9 }
0x202e   : > { %4288 = vmatmul.mubr.msk.f32.vlgmr.msra.gmra.mrb[32].mxu1 %vm3678_vm10, %v3674_v25 }
0x2101   : > { %v3748_v27 = vpop.f32.mrb[32].mxu1 }
0x2102   : > { %v3749_v28 = vadd.f32 %v3748_v27, %v3677_v26  ;;  %v4289_v29 = vpop.f32.mrb[33].mxu1 }
0x2104   : > { %3753 = vst.msk [vmem:[%s751_s24] sm:$0x1] %vm3752_vm11, %v3749_v28 }
0x2105   : > { %4470 = shalt.err (!%p4467_p3)
}
0x2106   : > { %s4471_s7 = scalar_lea.hbm %s5202_s25, 16  ;;  %s4475_s24 = scalar_lea.hbm %s5327_s4, 32 }
0x2107   : > { %p4472_p4 = scmp.ne.s32.totalorder %s5202_s25, %s4471_s7  ;;  %p4476_p9 = scmp.lt.u32.totalorder %s5202_s25, %s5327_s4 }
0x2108   : > { %p4477_p10 = scmp.lt.u32.totalorder %s4475_s24, %s4471_s7  ;;  %p4479_p12 = scmp.lt.u32.totalorder %s4471_s7, %s5202_s25 }
0x2109   : > { %p4473_p7 = pnand %p4472_p4, %p4700_p5 }
0x210a   : > { %p4478_p11 = por %p4477_p10, %p4476_p9 }
0x210b   : > { %p4474_p8 = pneg %p4473_p7 }
0x210c   : > { %p4480_p13 = por %p4479_p12, %p4478_p11 }
0x210e   : > { %p4481_p0 = pnand %p4480_p13, %p4474_p8 }
0x2110   : > { %4484 = shalt.err (!%p4481_p0)
}
0x2111   : > { %4356 = dma.vmem_to_hbm [thread:$0]  (%p4700_p5), %s5204_s5, 16, %s5202_s25, %s3755_s8  }
0x2112 PF: > { %s5328_s2 = sld [smem:[#allocation7_spill]]  ;;  %s5329_s3 = sld [smem:[#allocation5_spill]] }
0x2118   : > { %p4362_p1 = scmp.ge.s32.totalorder %s5328_s2, 2  ;;  %s3779_s29 = sand.u32 1, %s5329_s3  }
0x2119   : > { %s3780_s28 = scalar_lea.sflag [#allocation3], %s3779_s29 }
0x211a   : > { %p4359_p2 = pnand %p4362_p1, %p4704_p6 }
0x211c   : > { %4502 = dma.done.wait (!%p4359_p2), %s3780_s28, 16  }
0x211d   : > { %4504 = vsyncadd (!%p4359_p2), %s3780_s28, 4294967280  ;;  %s5331_s28 = sld [smem:[#allocation9_spill]]  ;;  %s5332_s7 = sld [smem:[#allocation6_spill]] }
0x211e   : > { %s5333_s27 = sld [smem:[#allocation10_spill]]  ;;  %s5334_s5 = smov %s4511_s26 }
0x2123   : > { %p34_p3 = scmp.ge.s32.totalorder %s5331_s28, 4   ;;  %s5335_s26 = smov %s5332_s7 }
0x2125   :  { %36 = sbr.rel (!%p34_p3) target bundleno = 17 (0x11), region = 169 }
0x212c   :  { %3784 = vsyncpa [#allocation3], 1 }
0x212d   :  { %3786 = vsyncpa [#allocation3 + $0x1], 1 }

</bundles_post_ra>
